<compile_context>
chip_gen: v5e
topology: v5e:2x2
jax: 0.10.0
libtpu: 0.0.40
codegen_flags: <defaults>
</compile_context>

<pallas_src>
import jax
import jax.numpy as jnp
import numpy as np
from jax import lax
from jax.experimental import pallas as pl
from jax.experimental.pallas import tpu as pltpu


def _detector_kernel(x_ref, c_ref, nhv_ref, bias_ref, o_ref):
    x = x_ref[...]                      # (tm, F), native dtype (f32 or bf16)
    c = c_ref[...]                      # (K, F), same dtype as x (resident)
    nhv = nhv_ref[...]                  # (K, 1) f32   (-0.5 / vars)
    bias = bias_ref[...]                # (K, 1) f32   (center norm + log prs - threshold)

    # Contract the feature axis of both operands (A . B^T, flash-attn style):
    dn = (((1,), (1,)), ((), ()))

    # (K, tm) cross term on the MXU — sample rows land on the lane axis.
    cross = lax.dot_general(c, x, dn, preferred_element_type=jnp.float32)

    # ||x_i||^2 as a lane-dense (1, tm) row via a single 1xF MXU push.
    xf = x.astype(jnp.float32)
    xsq = lax.dot_general(jnp.ones((1, xf.shape[1]), jnp.float32), xf * xf,
                          dn, preferred_element_type=jnp.float32)        # (1, tm)

    # a[j, i] = -0.5/var_j * ||x_i - c_j||^2 + log(pr_j) - threshold
    a = cross + nhv * xsq + bias                                         # (K, tm)

    # Numerically-stable logsumexp over centers (K <= 8 sublane rows: cheap reduce).
    m = jnp.max(a, axis=0, keepdims=True)                                # (1, tm)
    s = jnp.sum(jnp.exp(a - m), axis=0, keepdims=True)                   # (1, tm)
    o_ref[...] = (m + jnp.log(s)).astype(o_ref.dtype)                    # lane-dense row slab


def detector_kmeans_forward(x, centers, variances, prs, threshold, *, tm=1024):
    """Pallas implementation of DetectorKmeans.forward. Returns float32 (N,)."""
    N, F = x.shape
    K, _ = centers.shape
    assert tm % 128 == 0, "row tile must be a multiple of 128 (lane width)"

    # ---- center-side preprocessing hoisted out of the kernel (runs once) ----
    inv_var = 1.0 / variances.astype(jnp.float32)                        # (K,)
    c32 = centers.astype(jnp.float32)
    c_scaled = (c32 * inv_var[:, None]).astype(x.dtype)                  # (K, F), MXU feed dtype = X dtype
    nhv = (-0.5 * inv_var).reshape(K, 1)                                 # (K, 1) f32
    thr = jnp.asarray(threshold, jnp.float32).reshape(-1)[0]
    bias = (-0.5 * inv_var * jnp.sum(c32 * c32, axis=-1)
            + jnp.log(prs.astype(jnp.float32)) - thr).reshape(K, 1)      # (K, 1) f32

    # Pad rows so the grid tiles evenly; padded rows are computed and sliced off.
    n_pad = pl.cdiv(N, tm) * tm
    x_p = x if n_pad == N else jnp.pad(x, ((0, n_pad - N), (0, 0)))
    grid = (n_pad // tm,)

    out = pl.pallas_call(
        _detector_kernel,
        out_shape=jax.ShapeDtypeStruct((1, n_pad), jnp.float32),
        grid_spec=pltpu.PrefetchScalarGridSpec(
            num_scalar_prefetch=0,
            grid=grid,
            in_specs=[
                pl.BlockSpec((tm, F), lambda i: (i, 0)),   # X row tile (streamed)
                pl.BlockSpec((K, F), lambda i: (0, 0)),    # scaled centers (resident)
                pl.BlockSpec((K, 1), lambda i: (0, 0)),    # -0.5/vars (resident)
                pl.BlockSpec((K, 1), lambda i: (0, 0)),    # bias (resident)
            ],
            # lane-dense (1, tm) output slab; block sublane dim == full array dim.
            out_specs=pl.BlockSpec((1, tm), lambda i: (0, i)),
        ),
        compiler_params=pltpu.CompilerParams(
            dimension_semantics=("parallel",),      # shards grid across TCs on v7x
            # Raise above v5e's 16 MiB default; equal to v6e/v7x defaults (safe on
            # v7x's 64 MiB physical VMEM). Tiny usage here (~0.3 MiB double-buffered
            # at tm=1024, F=32) but leaves headroom for large-F production shapes.
            vmem_limit_bytes=32 * 1024 * 1024),
    )(x_p, c_scaled, nhv, bias)
    return out.reshape(-1)[:N]


def reference_forward(x, centers, variances, prs, threshold):
    # plain-JAX reference of the KeOps formula
    d = jnp.sum((x[:, None, :] - centers[None, :, :]) ** 2, axis=-1) / variances[None, :]
    dens = jax.scipy.special.logsumexp(-0.5 * d, axis=1, b=prs[None, :])
    return dens - threshold[0]


# TODO(synk): fit/fit_predict (k-means training, quantile-based threshold selection)
# are training-time host logic, not part of forward; not ported.

if __name__ == "__main__":
    N, F, K = 4096, 32, 8   # samples, features, centers (grid of 4 at tm=1024)

    key = jax.random.PRNGKey(0)
    kx, kc, kv, kp = jax.random.split(key, 4)

    x = jax.random.normal(kx, (N, F), dtype=jnp.float32)
    # deterministic synthetic parameters (module __init__ only allocates shapes)
    centers = jax.random.normal(kc, (K, F), dtype=jnp.float32)
    variances = 0.5 + jax.random.uniform(kv, (K,), dtype=jnp.float32)       # positive
    prs = jax.nn.softmax(jax.random.normal(kp, (K,), dtype=jnp.float32))    # positive, sums to 1
    threshold = jnp.array([-30.0], dtype=jnp.float32)

    out = detector_kmeans_forward(x, centers, variances, prs, threshold)
    out = jax.block_until_ready(out)

    ref = reference_forward(x, centers, variances, prs, threshold)
    np.testing.assert_allclose(np.asarray(out), np.asarray(ref), rtol=1e-4, atol=1e-4)

    print("KERNEL_OK")
</pallas_src>

<mosaic_0001>
module attributes {stable_mosaic.version = 11 : i64} {
  func.func @_detector_kernel(%arg0: i32, %arg1: memref<1024x32xf32, #tpu.memory_space<vmem>>, %arg2: memref<8x32xf32, #tpu.memory_space<vmem>>, %arg3: memref<8x1xf32, #tpu.memory_space<vmem>>, %arg4: memref<8x1xf32, #tpu.memory_space<vmem>>, %arg5: memref<1x1024xf32, #tpu.memory_space<vmem>>) attributes {dimension_semantics = [#tpu.dimension_semantics<parallel>], iteration_bounds = array<i64: 4>, scalar_prefetch = 0 : i64, scratch_operands = 0 : i64, tpu.core_type = #tpu.core_type<tc>, window_params = [{transform_indices = @transform_0, window_bounds = array<i64: 1024, 32>}, {pipeline_mode = #tpu.pipeline_mode<synchronous>, transform_indices = @transform_1, window_bounds = array<i64: 8, 32>}, {pipeline_mode = #tpu.pipeline_mode<synchronous>, transform_indices = @transform_2, window_bounds = array<i64: 8, 1>}, {pipeline_mode = #tpu.pipeline_mode<synchronous>, transform_indices = @transform_3, window_bounds = array<i64: 8, 1>}, {transform_indices = @transform_4, window_bounds = array<i64: 1, 1024>}]} {
    %c0 = arith.constant 0 : index
    %c0_0 = arith.constant 0 : index
    %0 = vector.load %arg1[%c0, %c0_0] : memref<1024x32xf32, #tpu.memory_space<vmem>>, vector<1024x32xf32>
    %c0_1 = arith.constant 0 : index
    %c0_2 = arith.constant 0 : index
    %1 = vector.load %arg2[%c0_1, %c0_2] : memref<8x32xf32, #tpu.memory_space<vmem>>, vector<8x32xf32>
    %c0_3 = arith.constant 0 : index
    %c0_4 = arith.constant 0 : index
    %2 = vector.load %arg3[%c0_3, %c0_4] : memref<8x1xf32, #tpu.memory_space<vmem>>, vector<8x1xf32>
    %c0_5 = arith.constant 0 : index
    %c0_6 = arith.constant 0 : index
    %3 = vector.load %arg4[%c0_5, %c0_6] : memref<8x1xf32, #tpu.memory_space<vmem>>, vector<8x1xf32>
    %cst = arith.constant dense<0.000000e+00> : vector<8x1024xf32>
    %4 = tpu.matmul %1, %0, %cst {dimension_numbers = #tpu.dot_dimension_numbers<[1], [1], [0], [0], [0, 0, 1, 0], [], []>} : vector<8x32xf32>, vector<1024x32xf32>, vector<8x1024xf32> -> vector<8x1024xf32>
    %cst_7 = arith.constant 1.000000e+00 : f32
    %5 = vector.broadcast %cst_7 : f32 to vector<1x32xf32>
    %6 = arith.mulf %0, %0 : vector<1024x32xf32>
    %cst_8 = arith.constant dense<0.000000e+00> : vector<1x1024xf32>
    %7 = tpu.matmul %5, %6, %cst_8 {dimension_numbers = #tpu.dot_dimension_numbers<[1], [1], [0], [0], [0, 0, 1, 0], [], []>} : vector<1x32xf32>, vector<1024x32xf32>, vector<1x1024xf32> -> vector<1x1024xf32>
    %8 = vector.broadcast %2 : vector<8x1xf32> to vector<8x1024xf32>
    %9 = vector.broadcast %7 : vector<1x1024xf32> to vector<8x1024xf32>
    %10 = arith.mulf %8, %9 : vector<8x1024xf32>
    %11 = arith.addf %4, %10 : vector<8x1024xf32>
    %12 = vector.broadcast %3 : vector<8x1xf32> to vector<8x1024xf32>
    %13 = arith.addf %11, %12 : vector<8x1024xf32>
    %cst_9 = arith.constant dense<0xFF800000> : vector<1024xf32>
    %14 = vector.multi_reduction <maximumf>, %13, %cst_9 [0] : vector<8x1024xf32> to vector<1024xf32>
    %15 = vector.shape_cast %14 : vector<1024xf32> to vector<1x1024xf32>
    %16 = vector.broadcast %15 : vector<1x1024xf32> to vector<8x1024xf32>
    %17 = arith.subf %13, %16 : vector<8x1024xf32>
    %18 = math.exp %17 : vector<8x1024xf32>
    %cst_10 = arith.constant dense<0.000000e+00> : vector<1024xf32>
    %19 = vector.multi_reduction <add>, %18, %cst_10 [0] : vector<8x1024xf32> to vector<1024xf32>
    %20 = vector.shape_cast %19 : vector<1024xf32> to vector<1x1024xf32>
    %21 = math.log %20 : vector<1x1024xf32>
    %22 = arith.addf %15, %21 : vector<1x1024xf32>
    %c0_11 = arith.constant 0 : index
    %c0_12 = arith.constant 0 : index
    %23 = vector.load %arg5[%c0_11, %c0_12] : memref<1x1024xf32, #tpu.memory_space<vmem>>, vector<1x1024xf32>
    tpu.vector_store %arg5[%c0_11, %c0_12], %22 {strides = array<i32>} : memref<1x1024xf32, #tpu.memory_space<vmem>>, vector<1x1024xf32>,
    return
  }
  func.func @transform_0(%arg0: i32) -> (i32, i32) {
    %c0_i32 = arith.constant 0 : i32
    %c0_i32_0 = arith.constant 0 : i32
    return %arg0, %c0_i32 : i32, i32
  }
  func.func @transform_1(%arg0: i32) -> (i32, i32) {
    %c0_i32 = arith.constant 0 : i32
    %c0_i32_0 = arith.constant 0 : i32
    %c0_i32_1 = arith.constant 0 : i32
    return %c0_i32, %c0_i32_0 : i32, i32
  }
  func.func @transform_2(%arg0: i32) -> (i32, i32) {
    %c0_i32 = arith.constant 0 : i32
    %c0_i32_0 = arith.constant 0 : i32
    %c0_i32_1 = arith.constant 0 : i32
    return %c0_i32, %c0_i32_0 : i32, i32
  }
  func.func @transform_3(%arg0: i32) -> (i32, i32) {
    %c0_i32 = arith.constant 0 : i32
    %c0_i32_0 = arith.constant 0 : i32
    %c0_i32_1 = arith.constant 0 : i32
    return %c0_i32, %c0_i32_0 : i32, i32
  }
  func.func @transform_4(%arg0: i32) -> (i32, i32) {
    %c0_i32 = arith.constant 0 : i32
    %c0_i32_0 = arith.constant 0 : i32
    return %c0_i32, %arg0 : i32, i32
  }
}

</mosaic_0001>

<bundles_post_ra>
// kernel: tpu_custom_call.1
= control target key start
LH: loop header
LB: loop body
LE: loop exit
PB: predicated region body
PF: predicated region fallthrough
CT: control target
= control target key end

     0   :  { %9 = vsyncpa [#allocation3], 0  ;;  %s3504_s0 = inlined_call_operand.vmem [shape: f32[4096,32], index: 0, kind: input, shape index: {}]   ;;  %s3505_s1 = inlined_call_operand.vmem [shape: f32[8,32], index: 1, kind: input, shape index: {}]   ;;  %s3506_s2 = inlined_call_operand.vmem [shape: f32[8,1], index: 2, kind: input, shape index: {}]   ;;  %s3507_s3 = inlined_call_operand.vmem [shape: f32[8,1], index: 3, kind: input, shape index: {}]   ;;  %s3508_s4 = inlined_call_operand.hbm [shape: f32[1,4096], index: 4, kind: output, shape index: {}]  }
   0x1   :  { %11 = vsyncpa [#allocation3 + $0x1], 0  ;;  %s2285_s15 = smov 0   ;;  %s2287_s16 = smov 0  }
   0x2   :  { %s2289_s17 = smov 0   ;;  %s2291_s18 = smov 0  }
   0x3 LB: > { %s2306_s19 = sadd.s32 4294967295, %s2256_s18   ;;  %s1837_s20 = sadd.s32 4294967294, %s2256_s18   ;;  %s2256_s18 = sphi %s2291_s18, %s3733_s18   ;;  %s2252_s17 = sphi %s2289_s17, %s3732_s17   ;;  %s2248_s16 = sphi %s2287_s16, %s3731_s16   ;;  %s2244_s15 = sphi %s2285_s15, %s3730_s15  }
   0x4   : > { %s2310_s21 = sadd.s32 1, %s2256_s18   ;;  %s113_s22 = sadd.s32 1, %s2252_s17 }
   0x5   : > { %s110_s23 = ssub.s32 %s2256_s18, %s2310_s21  ;;  %p123_p0 = scmp.ne.s32.totalorder %s2252_s17, %s2248_s16 }
   0x6   : > { %p111_p1 = scmp.eq.s32.totalorder %s110_s23, 0  ;;  %p124_p2 = scmp.eq.s32.totalorder %s2306_s19, 3 }
   0x7   : > { %p129_p3 = scmp.ne.s32.totalorder %s2248_s16, %s2244_s15  ;;  %p130_p4 = scmp.eq.s32.totalorder %s1837_s20, 3 }
   0x8   : > { %s2321_s24 = scalar_select %p111_p1, %s2252_s17, %s113_s22  }
   0x9   : > { %p2323_p5 = por %p124_p2, %p123_p0  ;;  %p2327_p6 = por %p130_p4, %p129_p3 }
   0xa   : > { %p1840_p7 = scmp.ge.s32.totalorder %s2256_s18, 1  ;;  %p166_p8 = scmp.lt.s32.totalorder %s2256_s18, 5 }
   0xc   : > { %p167_p9 = pnand %p1840_p7, %p166_p8 }
   0xe   : > { %170 = sbr.rel (%p167_p9) target bundleno = 476 (0x1dc), region = 36 }
  0x13   : > { %s1842_s27 = sshll.u32 %s2306_s19, 7  ;;  %vm458_vm0 = vcmask 261120   ;;  %s189_s12 = sand.u32 1, %s2248_s16   ;;  %vm1746_vm1 = vcmask 1040384   ;;  %vm1748_vm2 = vcmask 1042434   ;;  %vm1750_vm3 = vcmask 1041408  }
  0x14   : > { %p193_p10 = scmp.lt.s32.totalorder %s1842_s27, 511  ;;  %s3463_s13 = sshll.u32 %s189_s12, 3  ;;  %vm1752_vm4 = vcmask 1044484   ;;  %vm1754_vm5 = vcmask 1046534   ;;  %vm1756_vm6 = vcmask 1045508   ;;  %vm1758_vm7 = vcmask 1043456  }
  0x15   : > { %s2117_s14 = sshll.u32 %s2306_s19, 3  ;;  %s191_s19 = scalar_lea.vmem [#allocation2], %s3463_s13 }
  0x16   : > { %s3735_s27 = smov (!%p193_p10, %s1842_s27), 511  ;;  %s1773_s23 = scalar_lea.hbm %s3508_s4, %s2117_s14 }
  0x17   : > { %s1843_s28 = sshll.u32 %s3735_s27, 3  ;;  %s1775_s27 = sshll.u32 %s191_s19, 4  ;;  %s1776_s27 = int_to_ptr.vmem [resolvable:$true] %s1775_s27 }
  0x18   : > { %s2337_s5 = scalar_lea.vmem %s3504_s0, %s1843_s28  ;;  %s1777_s28 = sshll.u32 %s1773_s23, 4  ;;  %s1778_s28 = int_to_ptr.hbm [resolvable:$true] %s1777_s28 }
  0x19   : > { %v2340_v0 = vld [vmem:[%s2337_s5 + $0x78] sm:$0xff]  ;;  %v2358_v7 = vld [vmem:[%s2337_s5 + $0x70] sm:$0xff]  ;;  %v2384_v16 = vld [vmem:[%s2337_s5 + $0x68] sm:$0xff]  ;;  %s1763_s29 = scalar_lea.sflag [#allocation3], %s189_s12  ;;  %s2208_s30 = sshra.s32 %s1778_s28, 4  ;;  %s2209_s30 = int_to_ptr.hbm [resolvable:$true] %s2208_s30 }
  0x1a   : > { %v2343_v1 = vld [vmem:[%s2337_s5 + $0xf8] sm:$0xff]  ;;  %v345_v3 = vmul.f32 %v2340_v0, %v2340_v0  ;;  %v2361_v8 = vld [vmem:[%s2337_s5 + $0xf0] sm:$0xff]  ;;  %v344_v12 = vmul.f32 %v2358_v7, %v2358_v7  ;;  %v2387_v17 = vld [vmem:[%s2337_s5 + $0xe8] sm:$0xff]  ;;  %v343_v20 = vmul.f32 %v2384_v16, %v2384_v16  ;;  %s2214_s8 = scalar_lea.hbm %s3508_s4, 32  ;;  %p2215_p0 = scmp.lt.s32.totalorder %s2209_s30, %s3508_s4 }
  0x1b   : > { %v2346_v2 = vld [vmem:[%s2337_s5 + $0x178] sm:$0xff]  ;;  %v361_v4 = vmul.f32 %v2343_v1, %v2343_v1  ;;  %v2366_v10 = vld [vmem:[%s2337_s5 + $0x170] sm:$0xff]  ;;  %v360_v13 = vmul.f32 %v2361_v8, %v2361_v8  ;;  %v2390_v18 = vld [vmem:[%s2337_s5 + $0x168] sm:$0xff]  ;;  %v359_v21 = vmul.f32 %v2387_v17, %v2387_v17 }
  0x1c   : > { %v377_v5 = vmul.f32 %v2346_v2, %v2346_v2  ;;  %v2355_v6 = vld [vmem:[%s2337_s5 + $0x1f8] sm:$0xff]  ;;  %v2369_v11 = vld [vmem:[%s2337_s5 + $0x1f0] sm:$0xff]  ;;  %1844 = vmatpush.xpose.msk.msra.mxu0 %vm458_vm0, %v345_v3  ;;  %v376_v14 = vmul.f32 %v2366_v10, %v2366_v10  ;;  %v2393_v19 = vld [vmem:[%s2337_s5 + $0x1e8] sm:$0xff]  ;;  %v375_v22 = vmul.f32 %v2390_v18, %v2390_v18 }
  0x1d   : > { %v393_v9 = vmul.f32 %v2355_v6, %v2355_v6  ;;  %1861 = vmatpush.xpose.msk.msra.mxu1 %vm458_vm0, %v361_v4  ;;  %v392_v15 = vmul.f32 %v2369_v11, %v2369_v11  ;;  %v391_v23 = vmul.f32 %v2393_v19, %v2393_v19  ;;  %v2408_v24 = vld [vmem:[%s2337_s5 + $0x60] sm:$0xff]  ;;  %v2432_v32 = vld [vmem:[%s2337_s5 + $0x58] sm:$0xff]  ;;  %v2456_v40 = vld [vmem:[%s2337_s5 + $0x50] sm:$0xff] }
  0x1e   : > { %1878 = vmatpush.xpose.msk.msra.mxu2 %vm458_vm0, %v377_v5  ;;  %v2411_v25 = vld [vmem:[%s2337_s5 + $0xe0] sm:$0xff]  ;;  %v342_v28 = vmul.f32 %v2408_v24, %v2408_v24  ;;  %v2435_v33 = vld [vmem:[%s2337_s5 + $0xd8] sm:$0xff]  ;;  %v341_v36 = vmul.f32 %v2432_v32, %v2432_v32  ;;  %v2459_v41 = vld [vmem:[%s2337_s5 + $0xd0] sm:$0xff]  ;;  %v340_v44 = vmul.f32 %v2456_v40, %v2456_v40 }
  0x1f   : > { %1895 = vmatpush.xpose.msk.msra.mxu3 %vm458_vm0, %v393_v9  ;;  %v2414_v26 = vld [vmem:[%s2337_s5 + $0x160] sm:$0xff]  ;;  %v358_v29 = vmul.f32 %v2411_v25, %v2411_v25  ;;  %v2438_v34 = vld [vmem:[%s2337_s5 + $0x158] sm:$0xff]  ;;  %v357_v37 = vmul.f32 %v2435_v33, %v2435_v33  ;;  %v2462_v42 = vld [vmem:[%s2337_s5 + $0x150] sm:$0xff]  ;;  %v356_v45 = vmul.f32 %v2459_v41, %v2459_v41 }
  0x20   : > { %1845 = vmatpush.xpose.msk.msra.mxu0 %vm458_vm0, %v344_v12  ;;  %v2417_v27 = vld [vmem:[%s2337_s5 + $0x1e0] sm:$0xff]  ;;  %v374_v30 = vmul.f32 %v2414_v26, %v2414_v26  ;;  %v2441_v35 = vld [vmem:[%s2337_s5 + $0x1d8] sm:$0xff]  ;;  %v373_v38 = vmul.f32 %v2438_v34, %v2438_v34  ;;  %v2465_v43 = vld [vmem:[%s2337_s5 + $0x1d0] sm:$0xff]  ;;  %v372_v46 = vmul.f32 %v2462_v42, %v2462_v42 }
  0x21   : > { %1862 = vmatpush.xpose.msk.msra.mxu1 %vm458_vm0, %v360_v13  ;;  %v390_v31 = vmul.f32 %v2417_v27, %v2417_v27  ;;  %v389_v39 = vmul.f32 %v2441_v35, %v2441_v35  ;;  %v388_v47 = vmul.f32 %v2465_v43, %v2465_v43  ;;  %v2480_v48 = vld [vmem:[%s2337_s5 + $0x48] sm:$0xff]  ;;  %v2504_v56 = vld [vmem:[%s2337_s5 + $0x40] sm:$0xff]  ;;  %v2528_v3 = vld [vmem:[%s2337_s5 + $0x38] sm:$0xff] }
  0x22   : > { %1879 = vmatpush.xpose.msk.msra.mxu2 %vm458_vm0, %v376_v14  ;;  %v2483_v49 = vld [vmem:[%s2337_s5 + $0xc8] sm:$0xff]  ;;  %v339_v52 = vmul.f32 %v2480_v48, %v2480_v48  ;;  %v2507_v57 = vld [vmem:[%s2337_s5 + $0xc0] sm:$0xff]  ;;  %v338_v60 = vmul.f32 %v2504_v56, %v2504_v56  ;;  %v2531_v4 = vld [vmem:[%s2337_s5 + $0xb8] sm:$0xff]  ;;  %v337_v12 = vmul.f32 %v2528_v3, %v2528_v3 }
  0x23   : > { %1896 = vmatpush.xpose.msk.msra.mxu3 %vm458_vm0, %v392_v15  ;;  %v2486_v50 = vld [vmem:[%s2337_s5 + $0x148] sm:$0xff]  ;;  %v355_v53 = vmul.f32 %v2483_v49, %v2483_v49  ;;  %v2510_v58 = vld [vmem:[%s2337_s5 + $0x140] sm:$0xff]  ;;  %v354_v61 = vmul.f32 %v2507_v57, %v2507_v57  ;;  %v2534_v5 = vld [vmem:[%s2337_s5 + $0x138] sm:$0xff]  ;;  %v353_v13 = vmul.f32 %v2531_v4, %v2531_v4 }
  0x24   : > { %1846 = vmatpush.xpose.msk.msra.mxu0 %vm458_vm0, %v343_v20  ;;  %v2489_v51 = vld [vmem:[%s2337_s5 + $0x1c8] sm:$0xff]  ;;  %v371_v54 = vmul.f32 %v2486_v50, %v2486_v50  ;;  %v2513_v59 = vld [vmem:[%s2337_s5 + $0x1c0] sm:$0xff]  ;;  %v370_v62 = vmul.f32 %v2510_v58, %v2510_v58  ;;  %v2537_v9 = vld [vmem:[%s2337_s5 + $0x1b8] sm:$0xff]  ;;  %v369_v14 = vmul.f32 %v2534_v5, %v2534_v5 }
  0x25   : > { %1863 = vmatpush.xpose.msk.msra.mxu1 %vm458_vm0, %v359_v21  ;;  %v387_v55 = vmul.f32 %v2489_v51, %v2489_v51  ;;  %v386_v63 = vmul.f32 %v2513_v59, %v2513_v59  ;;  %v385_v15 = vmul.f32 %v2537_v9, %v2537_v9  ;;  %v2552_v20 = vld [vmem:[%s2337_s5 + $0x30] sm:$0xff] }
  0x26   : > { %1880 = vmatpush.xpose.msk.msra.mxu2 %vm458_vm0, %v375_v22  ;;  %v2555_v21 = vld [vmem:[%s2337_s5 + $0xb0] sm:$0xff] }
  0x27   : > { %1897 = vmatpush.xpose.msk.msra.mxu3 %vm458_vm0, %v391_v23  ;;  %v2558_v22 = vld [vmem:[%s2337_s5 + $0x130] sm:$0xff] }
  0x28   : > { %1847 = vmatpush.xpose.msk.msra.mxu0 %vm458_vm0, %v342_v28  ;;  %v2561_v23 = vld [vmem:[%s2337_s5 + $0x1b0] sm:$0xff]  ;;  %v336_v28 = vmul.f32 %v2552_v20, %v2552_v20 }
  0x29   : > { %1864 = vmatpush.xpose.msk.msra.mxu1 %vm458_vm0, %v358_v29  ;;  %v352_v29 = vmul.f32 %v2555_v21, %v2555_v21 }
  0x2a   : > { %1881 = vmatpush.xpose.msk.msra.mxu2 %vm458_vm0, %v374_v30  ;;  %v368_v30 = vmul.f32 %v2558_v22, %v2558_v22 }
  0x2b   : > { %1898 = vmatpush.xpose.msk.msra.mxu3 %vm458_vm0, %v390_v31  ;;  %v384_v31 = vmul.f32 %v2561_v23, %v2561_v23 }
  0x2c   : > { %1848 = vmatpush.xpose.msk.msra.mxu0 %vm458_vm0, %v341_v36  ;;  %v2576_v36 = vld [vmem:[%s2337_s5 + $0x28] sm:$0xff] }
  0x2d   : > { %1865 = vmatpush.xpose.msk.msra.mxu1 %vm458_vm0, %v357_v37  ;;  %v2579_v37 = vld [vmem:[%s2337_s5 + $0xa8] sm:$0xff] }
  0x2e   : > { %1882 = vmatpush.xpose.msk.msra.mxu2 %vm458_vm0, %v373_v38  ;;  %v2582_v38 = vld [vmem:[%s2337_s5 + $0x128] sm:$0xff] }
  0x2f   : > { %1899 = vmatpush.xpose.msk.msra.mxu3 %vm458_vm0, %v389_v39  ;;  %v2585_v39 = vld [vmem:[%s2337_s5 + $0x1a8] sm:$0xff] }
  0x30   : > { %1849 = vmatpush.xpose.msk.msra.mxu0 %vm458_vm0, %v340_v44  ;;  %v335_v44 = vmul.f32 %v2576_v36, %v2576_v36 }
  0x31   : > { %1866 = vmatpush.xpose.msk.msra.mxu1 %vm458_vm0, %v356_v45  ;;  %v351_v45 = vmul.f32 %v2579_v37, %v2579_v37 }
  0x32   : > { %1883 = vmatpush.xpose.msk.msra.mxu2 %vm458_vm0, %v372_v46  ;;  %v367_v46 = vmul.f32 %v2582_v38, %v2582_v38 }
  0x33   : > { %1900 = vmatpush.xpose.msk.msra.mxu3 %vm458_vm0, %v388_v47  ;;  %v383_v47 = vmul.f32 %v2585_v39, %v2585_v39 }
  0x34   : > { %1850 = vmatpush.xpose.msk.msra.mxu0 %vm458_vm0, %v339_v52  ;;  %v2600_v52 = vld [vmem:[%s2337_s5 + $0x20] sm:$0xff] }
  0x35   : > { %1867 = vmatpush.xpose.msk.msra.mxu1 %vm458_vm0, %v355_v53  ;;  %v2603_v53 = vld [vmem:[%s2337_s5 + $0xa0] sm:$0xff] }
  0x36   : > { %1884 = vmatpush.xpose.msk.msra.mxu2 %vm458_vm0, %v371_v54  ;;  %v2606_v54 = vld [vmem:[%s2337_s5 + $0x120] sm:$0xff] }
  0x37   : > { %1901 = vmatpush.xpose.msk.msra.mxu3 %vm458_vm0, %v387_v55  ;;  %v2609_v55 = vld [vmem:[%s2337_s5 + $0x1a0] sm:$0xff] }
  0x38   : > { %1851 = vmatpush.xpose.msk.msra.mxu0 %vm458_vm0, %v338_v60  ;;  %v334_v60 = vmul.f32 %v2600_v52, %v2600_v52 }
  0x39   : > { %1868 = vmatpush.xpose.msk.msra.mxu1 %vm458_vm0, %v354_v61  ;;  %v350_v61 = vmul.f32 %v2603_v53, %v2603_v53 }
  0x3a   : > { %1885 = vmatpush.xpose.msk.msra.mxu2 %vm458_vm0, %v370_v62  ;;  %v366_v62 = vmul.f32 %v2606_v54, %v2606_v54 }
  0x3b   : > { %1902 = vmatpush.xpose.msk.msra.mxu3 %vm458_vm0, %v386_v63  ;;  %v382_v63 = vmul.f32 %v2609_v55, %v2609_v55 }
  0x3c   : > { %1852 = vmatpush.xpose.msk.msra.mxu0 %vm458_vm0, %v337_v12  ;;  %v2624_v12 = vld [vmem:[%s2337_s5 + $0x18] sm:$0xff] }
  0x3d   : > { %1869 = vmatpush.xpose.msk.msra.mxu1 %vm458_vm0, %v353_v13  ;;  %3585 = vst [vmem:[#allocation5_spill] sm:$0xff] %v2624_v12  ;;  %v2627_v13 = vld [vmem:[%s2337_s5 + $0x98] sm:$0xff] }
  0x3e   : > { %1886 = vmatpush.xpose.msk.msra.mxu2 %vm458_vm0, %v369_v14  ;;  %3586 = vst [vmem:[#allocation6_spill] sm:$0xff] %v2627_v13  ;;  %v2630_v14 = vld [vmem:[%s2337_s5 + $0x118] sm:$0xff] }
  0x3f   : > { %1903 = vmatpush.xpose.msk.msra.mxu3 %vm458_vm0, %v385_v15  ;;  %3587 = vst [vmem:[#allocation7_spill] sm:$0xff] %v2630_v14  ;;  %v2633_v15 = vld [vmem:[%s2337_s5 + $0x198] sm:$0xff] }
  0x40   : > { %1853 = vmatpush.xpose.msk.msra.mxu0 %vm458_vm0, %v336_v28  ;;  %3588 = vst [vmem:[#allocation8_spill] sm:$0xff] %v2633_v15  ;;  %v333_v28 = vmul.f32 %v2624_v12, %v2624_v12  ;;  %v2740_v12 = vld [vmem:[%s2337_s5 + $0x270] sm:$0xff] }
  0x41   : > { %1870 = vmatpush.xpose.msk.msra.mxu1 %vm458_vm0, %v352_v29  ;;  %v349_v29 = vmul.f32 %v2627_v13, %v2627_v13  ;;  %3602 = vst [vmem:[#allocation22_spill] sm:$0xff] %v2740_v12 }
  0x42   : > { %1887 = vmatpush.xpose.msk.msra.mxu2 %vm458_vm0, %v368_v30  ;;  %v365_v30 = vmul.f32 %v2630_v14, %v2630_v14  ;;  %v2723_v14 = vld [vmem:[%s2337_s5 + $0x3f8] sm:$0xff] }
  0x43   : > { %1904 = vmatpush.xpose.msk.msra.mxu3 %vm458_vm0, %v384_v31  ;;  %v381_v31 = vmul.f32 %v2633_v15, %v2633_v15  ;;  %v2705_v15 = vld [vmem:[%s2337_s5 + $0x180] sm:$0xff]  ;;  %3601 = vst [vmem:[#allocation21_spill] sm:$0xff] %v2723_v14 }
  0x44   : > { %1854 = vmatpush.xpose.msk.msra.mxu0 %vm458_vm0, %v335_v44  ;;  %v2648_v44 = vld [vmem:[%s2337_s5 + $0x10] sm:$0xff] }
  0x45   : > { %1871 = vmatpush.xpose.msk.msra.mxu1 %vm458_vm0, %v351_v45  ;;  %3589 = vst [vmem:[#allocation9_spill] sm:$0xff] %v2648_v44  ;;  %v2651_v45 = vld [vmem:[%s2337_s5 + $0x90] sm:$0xff] }
  0x46   : > { %1888 = vmatpush.xpose.msk.msra.mxu2 %vm458_vm0, %v367_v46  ;;  %3590 = vst [vmem:[#allocation10_spill] sm:$0xff] %v2651_v45  ;;  %v2654_v46 = vld [vmem:[%s2337_s5 + $0x110] sm:$0xff] }
  0x47   : > { %1905 = vmatpush.xpose.msk.msra.mxu3 %vm458_vm0, %v383_v47  ;;  %3591 = vst [vmem:[#allocation11_spill] sm:$0xff] %v2654_v46  ;;  %v2657_v47 = vld [vmem:[%s2337_s5 + $0x190] sm:$0xff] }
  0x48   : > { %1855 = vmatpush.xpose.msk.msra.mxu0 %vm458_vm0, %v334_v60  ;;  %3592 = vst [vmem:[#allocation12_spill] sm:$0xff] %v2657_v47  ;;  %v332_v60 = vmul.f32 %v2648_v44, %v2648_v44  ;;  %v2696_v44 = vld [vmem:[%s2337_s5] sm:$0xff] }
  0x49   : > { %1872 = vmatpush.xpose.msk.msra.mxu1 %vm458_vm0, %v350_v61  ;;  %v348_v61 = vmul.f32 %v2651_v45, %v2651_v45  ;;  %v2678_v45 = vld [vmem:[%s2337_s5 + $0x108] sm:$0xff]  ;;  %3597 = vst [vmem:[#allocation17_spill] sm:$0xff] %v2696_v44 }
  0x4a   : > { %1889 = vmatpush.xpose.msk.msra.mxu2 %vm458_vm0, %v366_v62  ;;  %v364_v62 = vmul.f32 %v2654_v46, %v2654_v46  ;;  %3595 = vst [vmem:[#allocation15_spill] sm:$0xff] %v2678_v45  ;;  %v363_v46 = vmul.f32 %v2678_v45, %v2678_v45  ;;  %v2720_v45 = vld [vmem:[%s2337_s5 + $0x378] sm:$0xff] }
  0x4b   : > { %1906 = vmatpush.xpose.msk.msra.mxu3 %vm458_vm0, %v382_v63  ;;  %v380_v63 = vmul.f32 %v2657_v47, %v2657_v47  ;;  %v441_v13 = vmul.f32 %v2720_v45, %v2720_v45 }
  0x4c   : > { %1856 = vmatpush.xpose.msk.msra.mxu0 %vm458_vm0, %v333_v28  ;;  %v2672_v28 = vld [vmem:[%s2337_s5 + $0x8] sm:$0xff] }
  0x4d   : > { %1873 = vmatpush.xpose.msk.msra.mxu1 %vm458_vm0, %v349_v29  ;;  %3593 = vst [vmem:[#allocation13_spill] sm:$0xff] %v2672_v28  ;;  %v2675_v29 = vld [vmem:[%s2337_s5 + $0x88] sm:$0xff] }
  0x4e   : > { %1890 = vmatpush.xpose.msk.msra.mxu2 %vm458_vm0, %v365_v30  ;;  %3594 = vst [vmem:[#allocation14_spill] sm:$0xff] %v2675_v29  ;;  %v2681_v30 = vld [vmem:[%s2337_s5 + $0x188] sm:$0xff]  ;;  %v347_v47 = vmul.f32 %v2675_v29, %v2675_v29  ;;  %v2708_v29 = vld [vmem:[%s2337_s5 + $0x278] sm:$0xff] }
  0x4f   : > { %1907 = vmatpush.xpose.msk.msra.mxu3 %vm458_vm0, %v381_v31  ;;  %3596 = vst [vmem:[#allocation16_spill] sm:$0xff] %v2681_v30  ;;  %v331_v31 = vmul.f32 %v2672_v28, %v2672_v28  ;;  %v2702_v28 = vld [vmem:[%s2337_s5 + $0x100] sm:$0xff] }
  0x50   : > { %1857 = vmatpush.xpose.msk.msra.mxu0 %vm458_vm0, %v332_v60  ;;  %v379_v60 = vmul.f32 %v2681_v30, %v2681_v30  ;;  %3599 = vst [vmem:[#allocation19_spill] sm:$0xff] %v2708_v29 }
  0x51   : > { %1874 = vmatpush.xpose.msk.msra.mxu1 %vm458_vm0, %v348_v61  ;;  %v2699_v61 = vld [vmem:[%s2337_s5 + $0x80] sm:$0xff] }
  0x52   : > { %1891 = vmatpush.xpose.msk.msra.mxu2 %vm458_vm0, %v364_v62  ;;  %3598 = vst [vmem:[#allocation18_spill] sm:$0xff] %v2699_v61  ;;  %v2711_v62 = vld [vmem:[%s2337_s5 + $0x2f8] sm:$0xff]  ;;  %v346_v30 = vmul.f32 %v2699_v61, %v2699_v61 }
  0x53   : > { %1908 = vmatpush.xpose.msk.msra.mxu3 %vm458_vm0, %v380_v63  ;;  %3600 = vst [vmem:[#allocation20_spill] sm:$0xff] %v2711_v62  ;;  %v330_v63 = vmul.f32 %v2696_v44, %v2696_v44  ;;  %v409_v44 = vmul.f32 %v2708_v29, %v2708_v29  ;;  %v425_v61 = vmul.f32 %v2711_v62, %v2711_v62  ;;  %v2748_v29 = vld [vmem:[%s2337_s5 + $0x370] sm:$0xff] }
  0x54   : > { %1858 = vmatpush.xpose.msk.msra.mxu0 %vm458_vm0, %v331_v31  ;;  %v362_v31 = vmul.f32 %v2702_v28, %v2702_v28  ;;  %3604 = vst [vmem:[#allocation24_spill] sm:$0xff] %v2748_v29  ;;  %v2751_v62 = vld [vmem:[%s2337_s5 + $0x3f0] sm:$0xff] }
  0x55   : > { %1875 = vmatpush.xpose.msk.msra.mxu1 %vm458_vm0, %v347_v47  ;;  %v378_v47 = vmul.f32 %v2705_v15, %v2705_v15  ;;  %3605 = vst [vmem:[#allocation25_spill] sm:$0xff] %v2751_v62 }
  0x56   : > { %1892 = vmatpush.xpose.msk.msra.mxu2 %vm458_vm0, %v363_v46  ;;  %v457_v46 = vmul.f32 %v2723_v14, %v2723_v14  ;;  %v408_v14 = vmul.f32 %v2740_v12, %v2740_v12  ;;  %v2936_v12 = vld [vmem:[%s2337_s5 + $0x230] sm:$0xff] }
  0x57   : > { %1909 = vmatpush.xpose.msk.msra.mxu3 %vm458_vm0, %v379_v60  ;;  %v2743_v60 = vld [vmem:[%s2337_s5 + $0x2f0] sm:$0xff]  ;;  %3634 = vst [vmem:[#allocation54_spill] sm:$0xff] %v2936_v12 }
  0x58   : > { %3603 = vst [vmem:[#allocation23_spill] sm:$0xff] %v2743_v60  ;;  %1859 = vmatpush.xpose.msk.msra.mxu0 %vm458_vm0, %v330_v63  ;;  %v424_v63 = vmul.f32 %v2743_v60, %v2743_v60  ;;  %v2777_v60 = vld [vmem:[%s2337_s5 + $0x3e8] sm:$0xff] }
  0x59   : > { %1876 = vmatpush.xpose.msk.msra.mxu1 %vm458_vm0, %v346_v30  ;;  %v440_v30 = vmul.f32 %v2748_v29, %v2748_v29  ;;  %3609 = vst [vmem:[#allocation29_spill] sm:$0xff] %v2777_v60  ;;  %v2798_v29 = vld [vmem:[%s2337_s5 + $0x360] sm:$0xff] }
  0x5a   : > { %1893 = vmatpush.xpose.msk.msra.mxu2 %vm458_vm0, %v362_v31  ;;  %v2771_v31 = vld [vmem:[%s2337_s5 + $0x2e8] sm:$0xff]  ;;  %3612 = vst [vmem:[#allocation32_spill] sm:$0xff] %v2798_v29 }
  0x5b   : > { %1910 = vmatpush.xpose.msk.msra.mxu3 %vm458_vm0, %v378_v47  ;;  %3607 = vst [vmem:[#allocation27_spill] sm:$0xff] %v2771_v31  ;;  %v2774_v47 = vld [vmem:[%s2337_s5 + $0x368] sm:$0xff] }
  0x5c   : > { %1912 = vmatpush.xpose.msk.msrb.mxu0 %vm458_vm0, %v409_v44  ;;  %v456_v44 = vmul.f32 %v2751_v62, %v2751_v62  ;;  %3608 = vst [vmem:[#allocation28_spill] sm:$0xff] %v2774_v47  ;;  %v439_v62 = vmul.f32 %v2774_v47, %v2774_v47  ;;  %v2822_v47 = vld [vmem:[%s2337_s5 + $0x358] sm:$0xff] }
  0x5d   : > { %1929 = vmatpush.xpose.msk.msrb.mxu1 %vm458_vm0, %v425_v61  ;;  %v2768_v61 = vld [vmem:[%s2337_s5 + $0x268] sm:$0xff]  ;;  %3616 = vst [vmem:[#allocation36_spill] sm:$0xff] %v2822_v47 }
  0x5e   : > { %1946 = vmatpush.xpose.msk.msrb.mxu2 %vm458_vm0, %v441_v13  ;;  %3606 = vst [vmem:[#allocation26_spill] sm:$0xff] %v2768_v61  ;;  %v407_v13 = vmul.f32 %v2768_v61, %v2768_v61  ;;  %v2795_v61 = vld [vmem:[%s2337_s5 + $0x2e0] sm:$0xff] }
  0x5f   : > { %1963 = vmatpush.xpose.msk.msrb.mxu3 %vm458_vm0, %v457_v46  ;;  %v423_v46 = vmul.f32 %v2771_v31, %v2771_v31  ;;  %3611 = vst [vmem:[#allocation31_spill] sm:$0xff] %v2795_v61  ;;  %v2801_v31 = vld [vmem:[%s2337_s5 + $0x3e0] sm:$0xff] }
  0x60   : > { %1913 = vmatpush.xpose.msk.msrb.mxu0 %vm458_vm0, %v408_v14  ;;  %v455_v14 = vmul.f32 %v2777_v60, %v2777_v60  ;;  %3613 = vst [vmem:[#allocation33_spill] sm:$0xff] %v2801_v31  ;;  %v438_v60 = vmul.f32 %v2798_v29, %v2798_v29  ;;  %v2846_v29 = vld [vmem:[%s2337_s5 + $0x350] sm:$0xff] }
  0x61   : > { %1930 = vmatpush.xpose.msk.msrb.mxu1 %vm458_vm0, %v424_v63  ;;  %v2792_v63 = vld [vmem:[%s2337_s5 + $0x260] sm:$0xff]  ;;  %3620 = vst [vmem:[#allocation40_spill] sm:$0xff] %v2846_v29 }
  0x62   : > { %1947 = vmatpush.xpose.msk.msrb.mxu2 %vm458_vm0, %v440_v30  ;;  %3610 = vst [vmem:[#allocation30_spill] sm:$0xff] %v2792_v63  ;;  %v406_v30 = vmul.f32 %v2792_v63, %v2792_v63  ;;  %v2819_v63 = vld [vmem:[%s2337_s5 + $0x2d8] sm:$0xff] }
  0x63   : > { %1964 = vmatpush.xpose.msk.msrb.mxu3 %vm458_vm0, %v456_v44  ;;  %v422_v44 = vmul.f32 %v2795_v61, %v2795_v61  ;;  %3615 = vst [vmem:[#allocation35_spill] sm:$0xff] %v2819_v63  ;;  %v2825_v61 = vld [vmem:[%s2337_s5 + $0x3d8] sm:$0xff] }
  0x64   : > { %1914 = vmatpush.xpose.msk.msrb.mxu0 %vm458_vm0, %v407_v13  ;;  %v454_v13 = vmul.f32 %v2801_v31, %v2801_v31  ;;  %3617 = vst [vmem:[#allocation37_spill] sm:$0xff] %v2825_v61  ;;  %v437_v31 = vmul.f32 %v2822_v47, %v2822_v47  ;;  %v2870_v47 = vld [vmem:[%s2337_s5 + $0x348] sm:$0xff] }
  0x65   : > { %1931 = vmatpush.xpose.msk.msrb.mxu1 %vm458_vm0, %v423_v46  ;;  %v2816_v46 = vld [vmem:[%s2337_s5 + $0x258] sm:$0xff]  ;;  %3624 = vst [vmem:[#allocation44_spill] sm:$0xff] %v2870_v47 }
  0x66   : > { %1948 = vmatpush.xpose.msk.msrb.mxu2 %vm458_vm0, %v439_v62  ;;  %3614 = vst [vmem:[#allocation34_spill] sm:$0xff] %v2816_v46  ;;  %v405_v62 = vmul.f32 %v2816_v46, %v2816_v46  ;;  %v2843_v46 = vld [vmem:[%s2337_s5 + $0x2d0] sm:$0xff] }
  0x67   : > { %1965 = vmatpush.xpose.msk.msrb.mxu3 %vm458_vm0, %v455_v14  ;;  %v421_v14 = vmul.f32 %v2819_v63, %v2819_v63  ;;  %3619 = vst [vmem:[#allocation39_spill] sm:$0xff] %v2843_v46  ;;  %v2849_v63 = vld [vmem:[%s2337_s5 + $0x3d0] sm:$0xff] }
  0x68   : > { %1915 = vmatpush.xpose.msk.msrb.mxu0 %vm458_vm0, %v406_v30  ;;  %v453_v30 = vmul.f32 %v2825_v61, %v2825_v61  ;;  %3621 = vst [vmem:[#allocation41_spill] sm:$0xff] %v2849_v63  ;;  %v436_v61 = vmul.f32 %v2846_v29, %v2846_v29  ;;  %v2894_v29 = vld [vmem:[%s2337_s5 + $0x340] sm:$0xff] }
  0x69   : > { %1932 = vmatpush.xpose.msk.msrb.mxu1 %vm458_vm0, %v422_v44  ;;  %v2840_v44 = vld [vmem:[%s2337_s5 + $0x250] sm:$0xff]  ;;  %3628 = vst [vmem:[#allocation48_spill] sm:$0xff] %v2894_v29 }
  0x6a   : > { %1949 = vmatpush.xpose.msk.msrb.mxu2 %vm458_vm0, %v438_v60  ;;  %3618 = vst [vmem:[#allocation38_spill] sm:$0xff] %v2840_v44  ;;  %v404_v60 = vmul.f32 %v2840_v44, %v2840_v44  ;;  %v2867_v44 = vld [vmem:[%s2337_s5 + $0x2c8] sm:$0xff] }
  0x6b   : > { %1966 = vmatpush.xpose.msk.msrb.mxu3 %vm458_vm0, %v454_v13  ;;  %v420_v13 = vmul.f32 %v2843_v46, %v2843_v46  ;;  %3623 = vst [vmem:[#allocation43_spill] sm:$0xff] %v2867_v44  ;;  %v2873_v46 = vld [vmem:[%s2337_s5 + $0x3c8] sm:$0xff] }
  0x6c   : > { %1916 = vmatpush.xpose.msk.msrb.mxu0 %vm458_vm0, %v405_v62  ;;  %v452_v62 = vmul.f32 %v2849_v63, %v2849_v63  ;;  %3625 = vst [vmem:[#allocation45_spill] sm:$0xff] %v2873_v46  ;;  %v435_v63 = vmul.f32 %v2870_v47, %v2870_v47  ;;  %v2918_v47 = vld [vmem:[%s2337_s5 + $0x338] sm:$0xff] }
  0x6d   : > { %1933 = vmatpush.xpose.msk.msrb.mxu1 %vm458_vm0, %v421_v14  ;;  %v2864_v14 = vld [vmem:[%s2337_s5 + $0x248] sm:$0xff]  ;;  %3632 = vst [vmem:[#allocation52_spill] sm:$0xff] %v2918_v47 }
  0x6e   : > { %1950 = vmatpush.xpose.msk.msrb.mxu2 %vm458_vm0, %v437_v31  ;;  %3622 = vst [vmem:[#allocation42_spill] sm:$0xff] %v2864_v14  ;;  %v403_v31 = vmul.f32 %v2864_v14, %v2864_v14  ;;  %v2891_v14 = vld [vmem:[%s2337_s5 + $0x2c0] sm:$0xff] }
  0x6f   : > { %1967 = vmatpush.xpose.msk.msrb.mxu3 %vm458_vm0, %v453_v30  ;;  %v419_v30 = vmul.f32 %v2867_v44, %v2867_v44  ;;  %3627 = vst [vmem:[#allocation47_spill] sm:$0xff] %v2891_v14  ;;  %v2897_v44 = vld [vmem:[%s2337_s5 + $0x3c0] sm:$0xff] }
  0x70   : > { %1917 = vmatpush.xpose.msk.msrb.mxu0 %vm458_vm0, %v404_v60  ;;  %v451_v60 = vmul.f32 %v2873_v46, %v2873_v46  ;;  %3629 = vst [vmem:[#allocation49_spill] sm:$0xff] %v2897_v44  ;;  %v434_v46 = vmul.f32 %v2894_v29, %v2894_v29 }
  0x71   : > { %1934 = vmatpush.xpose.msk.msrb.mxu1 %vm458_vm0, %v420_v13  ;;  %v2888_v13 = vld [vmem:[%s2337_s5 + $0x240] sm:$0xff] }
  0x72   : > { %1951 = vmatpush.xpose.msk.msrb.mxu2 %vm458_vm0, %v436_v61  ;;  %3626 = vst [vmem:[#allocation46_spill] sm:$0xff] %v2888_v13  ;;  %v402_v61 = vmul.f32 %v2888_v13, %v2888_v13  ;;  %v2915_v13 = vld [vmem:[%s2337_s5 + $0x2b8] sm:$0xff] }
  0x73   : > { %1968 = vmatpush.xpose.msk.msrb.mxu3 %vm458_vm0, %v452_v62  ;;  %v418_v62 = vmul.f32 %v2891_v14, %v2891_v14  ;;  %3631 = vst [vmem:[#allocation51_spill] sm:$0xff] %v2915_v13  ;;  %v2921_v14 = vld [vmem:[%s2337_s5 + $0x3b8] sm:$0xff] }
  0x74   : > { %1918 = vmatpush.xpose.msk.msrb.mxu0 %vm458_vm0, %v403_v31  ;;  %v450_v31 = vmul.f32 %v2897_v44, %v2897_v44  ;;  %3633 = vst [vmem:[#allocation53_spill] sm:$0xff] %v2921_v14  ;;  %v433_v44 = vmul.f32 %v2918_v47, %v2918_v47  ;;  %v449_v29 = vmul.f32 %v2921_v14, %v2921_v14 }
  0x75   : > { %1935 = vmatpush.xpose.msk.msrb.mxu1 %vm458_vm0, %v419_v30  ;;  %v2912_v30 = vld [vmem:[%s2337_s5 + $0x238] sm:$0xff] }
  0x76   : > { %1952 = vmatpush.xpose.msk.msrb.mxu2 %vm458_vm0, %v435_v63  ;;  %3630 = vst [vmem:[#allocation50_spill] sm:$0xff] %v2912_v30  ;;  %v401_v63 = vmul.f32 %v2912_v30, %v2912_v30  ;;  %v2945_v30 = vld [vmem:[%s2337_s5 + $0x3b0] sm:$0xff] }
  0x77   : > { %1969 = vmatpush.xpose.msk.msrb.mxu3 %vm458_vm0, %v451_v60  ;;  %v417_v60 = vmul.f32 %v2915_v13, %v2915_v13  ;;  %3637 = vst [vmem:[#allocation57_spill] sm:$0xff] %v2945_v30  ;;  %v3076_v13 = vld [vmem:[%s2337_s5 + $0x388] sm:$0xff] }
  0x78   : > { %1919 = vmatpush.xpose.msk.msrb.mxu0 %vm458_vm0, %v402_v61  ;;  %v2939_v61 = vld [vmem:[%s2337_s5 + $0x2b0] sm:$0xff]  ;;  %3656 = vst [vmem:[#allocation76_spill] sm:$0xff] %v3076_v13 }
  0x79   : > { %1936 = vmatpush.xpose.msk.msrb.mxu1 %vm458_vm0, %v418_v62  ;;  %3635 = vst [vmem:[#allocation55_spill] sm:$0xff] %v2939_v61  ;;  %v2942_v62 = vld [vmem:[%s2337_s5 + $0x330] sm:$0xff]  ;;  %v416_v14 = vmul.f32 %v2939_v61, %v2939_v61  ;;  %v2977_v61 = vld [vmem:[%s2337_s5 + $0x3a8] sm:$0xff] }
  0x7a   : > { %1953 = vmatpush.xpose.msk.msrb.mxu2 %vm458_vm0, %v434_v46  ;;  %3636 = vst [vmem:[#allocation56_spill] sm:$0xff] %v2942_v62  ;;  %v3557_v46 = vmov 1.0   ;;  %v432_v47 = vmul.f32 %v2942_v62, %v2942_v62  ;;  %v2998_v62 = vld [vmem:[%s2337_s5 + $0x320] sm:$0xff] }
  0x7b   : > { %1970 = vmatpush.xpose.msk.msrb.mxu3 %vm458_vm0, %v450_v31  ;;  %1860 = vmatmul.msk.f32.vlgmr.msra.gmra.mxu0 %vm458_vm0, %v3557_v46  ;;  %v400_v31 = vmul.f32 %v2936_v12, %v2936_v12  ;;  %v2974_v12 = vld [vmem:[%s2337_s5 + $0x328] sm:$0xff]  ;;  %3641 = vst [vmem:[#allocation61_spill] sm:$0xff] %v2977_v61 }
  0x7c   : > { %1877 = vmatmul.msk.f32.vlgmr.msra.gmra.mxu1 %vm458_vm0, %v3557_v46  ;;  %1894 = vmatmul.msk.f32.vlgmr.msra.gmra.mxu2 %vm458_vm0, %v3557_v46  ;;  %3640 = vst [vmem:[#allocation60_spill] sm:$0xff] %v2974_v12 }
  0x7d   : > { %1911 = vmatmul.msk.f32.vlgmr.msra.gmra.mxu3 %vm458_vm0, %v3557_v46  ;;  %1920 = vmatpush.xpose.msk.msrb.mxu0 %vm458_vm0, %v401_v63  ;;  %v448_v63 = vmul.f32 %v2945_v30, %v2945_v30  ;;  %v2971_v46 = vld [vmem:[%s2337_s5 + $0x2a8] sm:$0xff]  ;;  %v431_v30 = vmul.f32 %v2974_v12, %v2974_v12  ;;  %3644 = vst [vmem:[#allocation64_spill] sm:$0xff] %v2998_v62  ;;  %v3022_v12 = vld [vmem:[%s2337_s5 + $0x318] sm:$0xff] }
  0x7e   : > { %1937 = vmatpush.xpose.msk.msrb.mxu1 %vm458_vm0, %v417_v60  ;;  %1954 = vmatpush.xpose.msk.msrb.mxu2 %vm458_vm0, %v433_v44  ;;  %v2968_v60 = vld [vmem:[%s2337_s5 + $0x228] sm:$0xff]  ;;  %3639 = vst [vmem:[#allocation59_spill] sm:$0xff] %v2971_v46  ;;  %v415_v44 = vmul.f32 %v2971_v46, %v2971_v46  ;;  %v3001_v46 = vld [vmem:[%s2337_s5 + $0x3a0] sm:$0xff] }
  0x7f   : > { %1971 = vmatpush.xpose.msk.msrb.mxu3 %vm458_vm0, %v449_v29  ;;  %3638 = vst [vmem:[#allocation58_spill] sm:$0xff] %v2968_v60  ;;  %v399_v29 = vmul.f32 %v2968_v60, %v2968_v60  ;;  %v2995_v60 = vld [vmem:[%s2337_s5 + $0x2a0] sm:$0xff] }
  0x80   : > { %3643 = vst [vmem:[#allocation63_spill] sm:$0xff] %v2995_v60 }
  0x81   : > { %1921 = vmatpush.xpose.msk.msrb.mxu0 %vm458_vm0, %v400_v31  ;;  %v447_v31 = vmul.f32 %v2977_v61, %v2977_v61  ;;  %3645 = vst [vmem:[#allocation65_spill] sm:$0xff] %v3001_v46  ;;  %v430_v61 = vmul.f32 %v2998_v62, %v2998_v62  ;;  %v3046_v62 = vld [vmem:[%s2337_s5 + $0x310] sm:$0xff] }
  0x82   : > { %1938 = vmatpush.xpose.msk.msrb.mxu1 %vm458_vm0, %v416_v14  ;;  %1955 = vmatpush.xpose.msk.msrb.mxu2 %vm458_vm0, %v432_v47  ;;  %v2992_v14 = vld [vmem:[%s2337_s5 + $0x220] sm:$0xff]  ;;  %3648 = vst [vmem:[#allocation68_spill] sm:$0xff] %v3022_v12 }
  0x83   : > { %1972 = vmatpush.xpose.msk.msrb.mxu3 %vm458_vm0, %v448_v63  ;;  %3642 = vst [vmem:[#allocation62_spill] sm:$0xff] %v2992_v14  ;;  %v398_v47 = vmul.f32 %v2992_v14, %v2992_v14  ;;  %v414_v63 = vmul.f32 %v2995_v60, %v2995_v60  ;;  %v3019_v14 = vld [vmem:[%s2337_s5 + $0x298] sm:$0xff] }
  0x84   : > { %3647 = vst [vmem:[#allocation67_spill] sm:$0xff] %v3019_v14  ;;  %v3025_v60 = vld [vmem:[%s2337_s5 + $0x398] sm:$0xff] }
  0x85   : > { %1922 = vmatpush.xpose.msk.msrb.mxu0 %vm458_vm0, %v399_v29  ;;  %v446_v29 = vmul.f32 %v3001_v46, %v3001_v46  ;;  %3649 = vst [vmem:[#allocation69_spill] sm:$0xff] %v3025_v60  ;;  %v429_v46 = vmul.f32 %v3022_v12, %v3022_v12  ;;  %v428_v12 = vmul.f32 %v3046_v62, %v3046_v62 }
  0x86   : > { %1939 = vmatpush.xpose.msk.msrb.mxu1 %vm458_vm0, %v415_v44  ;;  %1956 = vmatpush.xpose.msk.msrb.mxu2 %vm458_vm0, %v431_v30  ;;  %v3016_v44 = vld [vmem:[%s2337_s5 + $0x218] sm:$0xff]  ;;  %3652 = vst [vmem:[#allocation72_spill] sm:$0xff] %v3046_v62 }
  0x87   : > { %1973 = vmatpush.xpose.msk.msrb.mxu3 %vm458_vm0, %v447_v31  ;;  %3646 = vst [vmem:[#allocation66_spill] sm:$0xff] %v3016_v44  ;;  %v397_v30 = vmul.f32 %v3016_v44, %v3016_v44  ;;  %v413_v31 = vmul.f32 %v3019_v14, %v3019_v14  ;;  %v3043_v44 = vld [vmem:[%s2337_s5 + $0x290] sm:$0xff] }
  0x88   : > { %3651 = vst [vmem:[#allocation71_spill] sm:$0xff] %v3043_v44  ;;  %v3049_v14 = vld [vmem:[%s2337_s5 + $0x390] sm:$0xff] }
  0x89   : > { %1923 = vmatpush.xpose.msk.msrb.mxu0 %vm458_vm0, %v398_v47  ;;  %v445_v47 = vmul.f32 %v3025_v60, %v3025_v60  ;;  %3653 = vst [vmem:[#allocation73_spill] sm:$0xff] %v3049_v14  ;;  %v328_v60 = vld [vmem:[%s3506_s2] sm:$0xff] }
  0x8a   : > { %1940 = vmatpush.xpose.msk.msrb.mxu1 %vm458_vm0, %v414_v63  ;;  %1957 = vmatpush.xpose.msk.msrb.mxu2 %vm458_vm0, %v430_v61  ;;  %v3040_v63 = vld [vmem:[%s2337_s5 + $0x210] sm:$0xff] }
  0x8b   : > { %1974 = vmatpush.xpose.msk.msrb.mxu3 %vm458_vm0, %v446_v29  ;;  %3650 = vst [vmem:[#allocation70_spill] sm:$0xff] %v3040_v63  ;;  %v396_v61 = vmul.f32 %v3040_v63, %v3040_v63  ;;  %v412_v29 = vmul.f32 %v3043_v44, %v3043_v44  ;;  %v3070_v63 = vld [vmem:[%s2337_s5 + $0x288] sm:$0xff] }
  0x8c   : > { %v3073_v44 = vld [vmem:[%s2337_s5 + $0x308] sm:$0xff] }
  0x8d   : > { %1924 = vmatpush.xpose.msk.msrb.mxu0 %vm458_vm0, %v397_v30  ;;  %v444_v30 = vmul.f32 %v3049_v14, %v3049_v14  ;;  %3655 = vst [vmem:[#allocation75_spill] sm:$0xff] %v3073_v44  ;;  %v411_v14 = vmul.f32 %v3070_v63, %v3070_v63  ;;  %v427_v62 = vmul.f32 %v3073_v44, %v3073_v44 }
  0x8e   : > { %1941 = vmatpush.xpose.msk.msrb.mxu1 %vm458_vm0, %v413_v31  ;;  %1958 = vmatpush.xpose.msk.msrb.mxu2 %vm458_vm0, %v429_v46  ;;  %v3067_v31 = vld [vmem:[%s2337_s5 + $0x208] sm:$0xff]  ;;  %v2259_v46 = vmov 0  }
  0x8f   : > { %1975 = vmatpush.xpose.msk.msrb.mxu3 %vm458_vm0, %v445_v47  ;;  %3654 = vst [vmem:[#allocation74_spill] sm:$0xff] %v3067_v31  ;;  %2161 = vset.pattern.permute.xlu0 %v2259_v46  ;;  %v395_v47 = vmul.f32 %v3067_v31, %v3067_v31  ;;  %v3091_v46 = vld [vmem:[%s2337_s5 + $0x200] sm:$0xff] }
  0x90   : > { %1008 = vperm.xlu0 %2161, %v328_v60   ;;  %v443_v60 = vmul.f32 %v3076_v13, %v3076_v13  ;;  %v3100_v31 = vld [vmem:[%s2337_s5 + $0x380] sm:$0xff] }
  0x91   : > { %1925 = vmatpush.xpose.msk.msrb.mxu0 %vm458_vm0, %v396_v61  ;;  %v3094_v61 = vld [vmem:[%s2337_s5 + $0x280] sm:$0xff]  ;;  %v442_v44 = vmul.f32 %v3100_v31, %v3100_v31 }
  0x92   : > { %1942 = vmatpush.xpose.msk.msrb.mxu1 %vm458_vm0, %v412_v29  ;;  %1959 = vmatpush.xpose.msk.msrb.mxu2 %vm458_vm0, %v428_v12  ;;  %v3097_v29 = vld [vmem:[%s2337_s5 + $0x300] sm:$0xff]  ;;  %v394_v12 = vmul.f32 %v3091_v46, %v3091_v46  ;;  %s2210_s5 = scalar_lea.hbm %s2209_s30, 8 }
  0x93   : > { %1976 = vmatpush.xpose.msk.msrb.mxu3 %vm458_vm0, %v444_v30  ;;  %v410_v30 = vmul.f32 %v3094_v61, %v3094_v61  ;;  %v426_v13 = vmul.f32 %v3097_v29, %v3097_v29  ;;  %p2211_p11 = scmp.ne.s32.totalorder %s2209_s30, %s2210_s5  ;;  %p2216_p1 = scmp.lt.s32.totalorder %s2214_s8, %s2210_s5 }
  0x95   : > { %1926 = vmatpush.xpose.msk.msrb.mxu0 %vm458_vm0, %v395_v47  ;;  %v3710_v47 = vld [vmem:[#allocation57_spill] sm:$0xff]  ;;  %p2212_p12 = pnand %p2211_p11, %p2323_p5  ;;  %p2217_p2 = por %p2216_p1, %p2215_p0 }
  0x96   : > { %1943 = vmatpush.xpose.msk.msrb.mxu1 %vm458_vm0, %v411_v14  ;;  %1960 = vmatpush.xpose.msk.msrb.mxu2 %vm458_vm0, %v427_v62  ;;  %v3657_v62 = vmov 1.0   ;;  %v3708_v14 = vld [vmem:[#allocation55_spill] sm:$0xff] }
  0x97   : > { %1977 = vmatpush.xpose.msk.msrb.mxu3 %vm458_vm0, %v443_v60  ;;  %v3711_v60 = vld [vmem:[#allocation58_spill] sm:$0xff]  ;;  %p2213_p13 = pneg %p2212_p12 }
  0x99   : > { %1927 = vmatpush.xpose.msk.msrb.mxu0 %vm458_vm0, %v394_v12  ;;  %v3712_v12 = vld [vmem:[#allocation59_spill] sm:$0xff]  ;;  %p2218_p3 = pnand %p2217_p2, %p2213_p13 }
  0x9a   : > { %1944 = vmatpush.xpose.msk.msrb.mxu1 %vm458_vm0, %v410_v30  ;;  %1961 = vmatpush.xpose.msk.msrb.mxu2 %vm458_vm0, %v426_v13  ;;  %v3707_v13 = vld [vmem:[#allocation54_spill] sm:$0xff]  ;;  %v3713_v30 = vld [vmem:[#allocation60_spill] sm:$0xff] }
  0x9b   : > { %1978 = vmatpush.xpose.msk.msrb.mxu3 %vm458_vm0, %v442_v44  ;;  %v3709_v44 = vld [vmem:[#allocation56_spill] sm:$0xff] }
  0x9c   : > { %1928 = vmatmul.msk.f32.vlgmr.msrb.gmra.mxu0 %vm458_vm0, %v3657_v62 }
  0x9d   : > { %1980 = vmatpush.xpose.msk.msra.mxu0 %vm458_vm0, %v2340_v0  ;;  %1945 = vmatmul.msk.f32.vlgmr.msrb.gmra.mxu1 %vm458_vm0, %v3657_v62  ;;  %v329_v0 = vld [vmem:[%s3507_s3] sm:$0xff] }
  0x9e   : > { %1997 = vmatpush.xpose.msk.msra.mxu1 %vm458_vm0, %v2343_v1  ;;  %2014 = vmatpush.xpose.msk.msra.mxu2 %vm458_vm0, %v2346_v2  ;;  %v3658_v1 = vld [vmem:[#allocation5_spill] sm:$0xff]  ;;  %v3659_v2 = vld [vmem:[#allocation6_spill] sm:$0xff] }
  0x9f   : > { %2031 = vmatpush.xpose.msk.msra.mxu3 %vm458_vm0, %v2355_v6  ;;  %1962 = vmatmul.msk.f32.vlgmr.msrb.gmra.mxu2 %vm458_vm0, %v3657_v62  ;;  %v3660_v6 = vld [vmem:[#allocation7_spill] sm:$0xff] }
  0xa0   : > { %1979 = vmatmul.msk.f32.vlgmr.msrb.gmra.mxu3 %vm458_vm0, %v3657_v62  ;;  %1576 = vperm.xlu0 %2161, %v329_v0   ;;  %v3714_v62 = vld [vmem:[#allocation61_spill] sm:$0xff]  ;;  %v3715_v0 = vld [vmem:[#allocation62_spill] sm:$0xff] }
  0xa1   : > { %1981 = vmatpush.xpose.msk.msra.mxu0 %vm458_vm0, %v2358_v7  ;;  %v3661_v7 = vld [vmem:[#allocation8_spill] sm:$0xff] }
  0xa2   : > { %1998 = vmatpush.xpose.msk.msra.mxu1 %vm458_vm0, %v2361_v8  ;;  %2015 = vmatpush.xpose.msk.msra.mxu2 %vm458_vm0, %v2366_v10  ;;  %v3662_v8 = vld [vmem:[#allocation9_spill] sm:$0xff]  ;;  %v3663_v10 = vld [vmem:[#allocation10_spill] sm:$0xff] }
  0xa3   : > { %2032 = vmatpush.xpose.msk.msra.mxu3 %vm458_vm0, %v2369_v11  ;;  %v3664_v11 = vld [vmem:[#allocation11_spill] sm:$0xff] }
  0xa5   : > { %1982 = vmatpush.xpose.msk.msra.mxu0 %vm458_vm0, %v2384_v16  ;;  %v3665_v16 = vld [vmem:[#allocation12_spill] sm:$0xff] }
  0xa6   : > { %1999 = vmatpush.xpose.msk.msra.mxu1 %vm458_vm0, %v2387_v17  ;;  %2016 = vmatpush.xpose.msk.msra.mxu2 %vm458_vm0, %v2390_v18  ;;  %v3666_v17 = vld [vmem:[#allocation13_spill] sm:$0xff]  ;;  %v3667_v18 = vld [vmem:[#allocation14_spill] sm:$0xff] }
  0xa7   : > { %2033 = vmatpush.xpose.msk.msra.mxu3 %vm458_vm0, %v2393_v19  ;;  %v3668_v19 = vld [vmem:[#allocation15_spill] sm:$0xff] }
  0xa9   : > { %1983 = vmatpush.xpose.msk.msra.mxu0 %vm458_vm0, %v2408_v24  ;;  %v3669_v24 = vld [vmem:[#allocation16_spill] sm:$0xff] }
  0xaa   : > { %2000 = vmatpush.xpose.msk.msra.mxu1 %vm458_vm0, %v2411_v25  ;;  %2017 = vmatpush.xpose.msk.msra.mxu2 %vm458_vm0, %v2414_v26  ;;  %v3670_v25 = vld [vmem:[#allocation17_spill] sm:$0xff]  ;;  %v3671_v26 = vld [vmem:[#allocation18_spill] sm:$0xff] }
  0xab   : > { %2034 = vmatpush.xpose.msk.msra.mxu3 %vm458_vm0, %v2417_v27  ;;  %v3260_v27 = vld [vmem:[%s3505_s1] sm:$0xff] }
  0xad   : > { %1984 = vmatpush.xpose.msk.msra.mxu0 %vm458_vm0, %v2432_v32  ;;  %v3672_v32 = vld [vmem:[#allocation19_spill] sm:$0xff] }
  0xae   : > { %2001 = vmatpush.xpose.msk.msra.mxu1 %vm458_vm0, %v2435_v33  ;;  %2018 = vmatpush.xpose.msk.msra.mxu2 %vm458_vm0, %v2438_v34  ;;  %v3673_v33 = vld [vmem:[#allocation20_spill] sm:$0xff]  ;;  %v3674_v34 = vld [vmem:[#allocation21_spill] sm:$0xff] }
  0xaf   : > { %2035 = vmatpush.xpose.msk.msra.mxu3 %vm458_vm0, %v2441_v35  ;;  %v3675_v35 = vld [vmem:[#allocation22_spill] sm:$0xff] }
  0xb1   : > { %1985 = vmatpush.xpose.msk.msra.mxu0 %vm458_vm0, %v2456_v40  ;;  %v3676_v40 = vld [vmem:[#allocation23_spill] sm:$0xff] }
  0xb2   : > { %2002 = vmatpush.xpose.msk.msra.mxu1 %vm458_vm0, %v2459_v41  ;;  %2019 = vmatpush.xpose.msk.msra.mxu2 %vm458_vm0, %v2462_v42  ;;  %v3677_v41 = vld [vmem:[#allocation24_spill] sm:$0xff]  ;;  %v3678_v42 = vld [vmem:[#allocation25_spill] sm:$0xff] }
  0xb3   : > { %2036 = vmatpush.xpose.msk.msra.mxu3 %vm458_vm0, %v2465_v43  ;;  %v3679_v43 = vld [vmem:[#allocation26_spill] sm:$0xff] }
  0xb5   : > { %1986 = vmatpush.xpose.msk.msra.mxu0 %vm458_vm0, %v2480_v48  ;;  %v3680_v48 = vld [vmem:[#allocation27_spill] sm:$0xff] }
  0xb6   : > { %2003 = vmatpush.xpose.msk.msra.mxu1 %vm458_vm0, %v2483_v49  ;;  %2020 = vmatpush.xpose.msk.msra.mxu2 %vm458_vm0, %v2486_v50  ;;  %v3681_v49 = vld [vmem:[#allocation28_spill] sm:$0xff]  ;;  %v3682_v50 = vld [vmem:[#allocation29_spill] sm:$0xff] }
  0xb7   : > { %2037 = vmatpush.xpose.msk.msra.mxu3 %vm458_vm0, %v2489_v51  ;;  %v3683_v51 = vld [vmem:[#allocation30_spill] sm:$0xff] }
  0xb9   : > { %1987 = vmatpush.xpose.msk.msra.mxu0 %vm458_vm0, %v2504_v56  ;;  %v3684_v56 = vld [vmem:[#allocation31_spill] sm:$0xff] }
  0xba   : > { %2004 = vmatpush.xpose.msk.msra.mxu1 %vm458_vm0, %v2507_v57  ;;  %2021 = vmatpush.xpose.msk.msra.mxu2 %vm458_vm0, %v2510_v58  ;;  %v3685_v57 = vld [vmem:[#allocation32_spill] sm:$0xff]  ;;  %v3686_v58 = vld [vmem:[#allocation33_spill] sm:$0xff] }
  0xbb   : > { %2038 = vmatpush.xpose.msk.msra.mxu3 %vm458_vm0, %v2513_v59  ;;  %v3687_v59 = vld [vmem:[#allocation34_spill] sm:$0xff] }
  0xbd   : > { %1988 = vmatpush.xpose.msk.msra.mxu0 %vm458_vm0, %v2528_v3  ;;  %v3688_v3 = vld [vmem:[#allocation35_spill] sm:$0xff] }
  0xbe   : > { %2005 = vmatpush.xpose.msk.msra.mxu1 %vm458_vm0, %v2531_v4  ;;  %2022 = vmatpush.xpose.msk.msra.mxu2 %vm458_vm0, %v2534_v5  ;;  %v3689_v4 = vld [vmem:[#allocation36_spill] sm:$0xff]  ;;  %v3690_v5 = vld [vmem:[#allocation37_spill] sm:$0xff] }
  0xbf   : > { %2039 = vmatpush.xpose.msk.msra.mxu3 %vm458_vm0, %v2537_v9  ;;  %v3691_v9 = vld [vmem:[#allocation38_spill] sm:$0xff] }
  0xc1   : > { %1989 = vmatpush.xpose.msk.msra.mxu0 %vm458_vm0, %v2552_v20  ;;  %v3692_v20 = vld [vmem:[#allocation39_spill] sm:$0xff] }
  0xc2   : > { %2006 = vmatpush.xpose.msk.msra.mxu1 %vm458_vm0, %v2555_v21  ;;  %2023 = vmatpush.xpose.msk.msra.mxu2 %vm458_vm0, %v2558_v22  ;;  %v3693_v21 = vld [vmem:[#allocation40_spill] sm:$0xff]  ;;  %v3694_v22 = vld [vmem:[#allocation41_spill] sm:$0xff] }
  0xc3   : > { %2040 = vmatpush.xpose.msk.msra.mxu3 %vm458_vm0, %v2561_v23  ;;  %v3695_v23 = vld [vmem:[#allocation42_spill] sm:$0xff] }
  0xc5   : > { %1990 = vmatpush.xpose.msk.msra.mxu0 %vm458_vm0, %v2576_v36  ;;  %v3696_v36 = vld [vmem:[#allocation43_spill] sm:$0xff] }
  0xc6   : > { %2007 = vmatpush.xpose.msk.msra.mxu1 %vm458_vm0, %v2579_v37  ;;  %2024 = vmatpush.xpose.msk.msra.mxu2 %vm458_vm0, %v2582_v38  ;;  %v3697_v37 = vld [vmem:[#allocation44_spill] sm:$0xff]  ;;  %v3698_v38 = vld [vmem:[#allocation45_spill] sm:$0xff] }
  0xc7   : > { %2041 = vmatpush.xpose.msk.msra.mxu3 %vm458_vm0, %v2585_v39  ;;  %v3699_v39 = vld [vmem:[#allocation46_spill] sm:$0xff] }
  0xc9   : > { %1991 = vmatpush.xpose.msk.msra.mxu0 %vm458_vm0, %v2600_v52  ;;  %v3700_v52 = vld [vmem:[#allocation47_spill] sm:$0xff] }
  0xca   : > { %2008 = vmatpush.xpose.msk.msra.mxu1 %vm458_vm0, %v2603_v53  ;;  %2025 = vmatpush.xpose.msk.msra.mxu2 %vm458_vm0, %v2606_v54  ;;  %v3701_v53 = vld [vmem:[#allocation48_spill] sm:$0xff]  ;;  %v3702_v54 = vld [vmem:[#allocation49_spill] sm:$0xff] }
  0xcb   : > { %2042 = vmatpush.xpose.msk.msra.mxu3 %vm458_vm0, %v2609_v55  ;;  %v3703_v55 = vld [vmem:[#allocation50_spill] sm:$0xff] }
  0xcd   : > { %1992 = vmatpush.xpose.msk.msra.mxu0 %vm458_vm0, %v3658_v1  ;;  %v3716_v1 = vld [vmem:[#allocation63_spill] sm:$0xff] }
  0xce   : > { %2009 = vmatpush.xpose.msk.msra.mxu1 %vm458_vm0, %v3659_v2  ;;  %2026 = vmatpush.xpose.msk.msra.mxu2 %vm458_vm0, %v3660_v6  ;;  %v3717_v2 = vld [vmem:[#allocation64_spill] sm:$0xff]  ;;  %v3718_v6 = vld [vmem:[#allocation65_spill] sm:$0xff] }
  0xcf   : > { %2043 = vmatpush.xpose.msk.msra.mxu3 %vm458_vm0, %v3661_v7  ;;  %v3719_v7 = vld [vmem:[#allocation66_spill] sm:$0xff] }
  0xd1   : > { %1993 = vmatpush.xpose.msk.msra.mxu0 %vm458_vm0, %v3662_v8  ;;  %v3720_v8 = vld [vmem:[#allocation67_spill] sm:$0xff] }
  0xd2   : > { %2010 = vmatpush.xpose.msk.msra.mxu1 %vm458_vm0, %v3663_v10  ;;  %2027 = vmatpush.xpose.msk.msra.mxu2 %vm458_vm0, %v3664_v11  ;;  %v3721_v10 = vld [vmem:[#allocation68_spill] sm:$0xff]  ;;  %v3722_v11 = vld [vmem:[#allocation69_spill] sm:$0xff] }
  0xd3   : > { %2044 = vmatpush.xpose.msk.msra.mxu3 %vm458_vm0, %v3665_v16  ;;  %v3723_v16 = vld [vmem:[#allocation70_spill] sm:$0xff] }
  0xd5   : > { %1994 = vmatpush.xpose.msk.msra.mxu0 %vm458_vm0, %v3666_v17  ;;  %v3724_v17 = vld [vmem:[#allocation71_spill] sm:$0xff] }
  0xd6   : > { %2011 = vmatpush.xpose.msk.msra.mxu1 %vm458_vm0, %v3667_v18  ;;  %2028 = vmatpush.xpose.msk.msra.mxu2 %vm458_vm0, %v3668_v19  ;;  %v3725_v18 = vld [vmem:[#allocation72_spill] sm:$0xff]  ;;  %v3726_v19 = vld [vmem:[#allocation73_spill] sm:$0xff] }
  0xd7   : > { %2045 = vmatpush.xpose.msk.msra.mxu3 %vm458_vm0, %v3669_v24  ;;  %v3727_v24 = vld [vmem:[#allocation74_spill] sm:$0xff] }
  0xd9   : > { %1995 = vmatpush.xpose.msk.msra.mxu0 %vm458_vm0, %v3670_v25  ;;  %v3728_v25 = vld [vmem:[#allocation75_spill] sm:$0xff] }
  0xda   : > { %2012 = vmatpush.xpose.msk.msra.mxu1 %vm458_vm0, %v3671_v26  ;;  %2029 = vmatpush.xpose.msk.msra.mxu2 %vm458_vm0, %v2702_v28  ;;  %v3706_v28 = vld [vmem:[#allocation53_spill] sm:$0xff]  ;;  %v3729_v26 = vld [vmem:[#allocation76_spill] sm:$0xff] }
  0xdb   : > { %2046 = vmatpush.xpose.msk.msra.mxu3 %vm458_vm0, %v2705_v15  ;;  %v3704_v15 = vld [vmem:[#allocation51_spill] sm:$0xff] }
  0xdc   : > { %1996 = vmatmul.msk.f32.vlgmr.msra.gmra.mxu0 %vm458_vm0, %v3260_v27 }
  0xdd   : > { %2048 = vmatpush.xpose.msk.msrb.mxu0 %vm458_vm0, %v3672_v32  ;;  %2013 = vmatmul.msk.f32.vlgmr.msra.gmra.mxu1 %vm458_vm0, %v3260_v27 }
  0xde   : > { %2065 = vmatpush.xpose.msk.msrb.mxu1 %vm458_vm0, %v3673_v33  ;;  %2082 = vmatpush.xpose.msk.msrb.mxu2 %vm458_vm0, %v2720_v45  ;;  %v3705_v45 = vld [vmem:[#allocation52_spill] sm:$0xff] }
  0xdf   : > { %2099 = vmatpush.xpose.msk.msrb.mxu3 %vm458_vm0, %v3674_v34  ;;  %2030 = vmatmul.msk.f32.vlgmr.msra.gmra.mxu2 %vm458_vm0, %v3260_v27 }
  0xe0   : > { %2047 = vmatmul.msk.f32.vlgmr.msra.gmra.mxu3 %vm458_vm0, %v3260_v27 }
  0xe1   : > { %2049 = vmatpush.xpose.msk.msrb.mxu0 %vm458_vm0, %v3675_v35 }
  0xe2   : > { %2066 = vmatpush.xpose.msk.msrb.mxu1 %vm458_vm0, %v3676_v40  ;;  %2083 = vmatpush.xpose.msk.msrb.mxu2 %vm458_vm0, %v3677_v41 }
  0xe3   : > { %2100 = vmatpush.xpose.msk.msrb.mxu3 %vm458_vm0, %v3678_v42 }
  0xe5   : > { %2050 = vmatpush.xpose.msk.msrb.mxu0 %vm458_vm0, %v3679_v43 }
  0xe6   : > { %2067 = vmatpush.xpose.msk.msrb.mxu1 %vm458_vm0, %v3680_v48  ;;  %2084 = vmatpush.xpose.msk.msrb.mxu2 %vm458_vm0, %v3681_v49 }
  0xe7   : > { %2101 = vmatpush.xpose.msk.msrb.mxu3 %vm458_vm0, %v3682_v50 }
  0xe9   : > { %2051 = vmatpush.xpose.msk.msrb.mxu0 %vm458_vm0, %v3683_v51 }
  0xea   : > { %2068 = vmatpush.xpose.msk.msrb.mxu1 %vm458_vm0, %v3684_v56  ;;  %2085 = vmatpush.xpose.msk.msrb.mxu2 %vm458_vm0, %v3685_v57 }
  0xeb   : > { %2102 = vmatpush.xpose.msk.msrb.mxu3 %vm458_vm0, %v3686_v58 }
  0xed   : > { %2052 = vmatpush.xpose.msk.msrb.mxu0 %vm458_vm0, %v3687_v59 }
  0xee   : > { %2069 = vmatpush.xpose.msk.msrb.mxu1 %vm458_vm0, %v3688_v3  ;;  %2086 = vmatpush.xpose.msk.msrb.mxu2 %vm458_vm0, %v3689_v4 }
  0xef   : > { %2103 = vmatpush.xpose.msk.msrb.mxu3 %vm458_vm0, %v3690_v5 }
  0xf1   : > { %2053 = vmatpush.xpose.msk.msrb.mxu0 %vm458_vm0, %v3691_v9 }
  0xf2   : > { %2070 = vmatpush.xpose.msk.msrb.mxu1 %vm458_vm0, %v3692_v20  ;;  %2087 = vmatpush.xpose.msk.msrb.mxu2 %vm458_vm0, %v3693_v21 }
  0xf3   : > { %2104 = vmatpush.xpose.msk.msrb.mxu3 %vm458_vm0, %v3694_v22 }
  0xf5   : > { %2054 = vmatpush.xpose.msk.msrb.mxu0 %vm458_vm0, %v3695_v23 }
  0xf6   : > { %2071 = vmatpush.xpose.msk.msrb.mxu1 %vm458_vm0, %v3696_v36  ;;  %2088 = vmatpush.xpose.msk.msrb.mxu2 %vm458_vm0, %v3697_v37 }
  0xf7   : > { %2105 = vmatpush.xpose.msk.msrb.mxu3 %vm458_vm0, %v3698_v38 }
  0xf8   : > { %v863_v32 = vpop.f32.mrf.mxu0 }
  0xf9   : > { %2055 = vmatpush.xpose.msk.msrb.mxu0 %vm458_vm0, %v3699_v39  ;;  %v1011_v58 = vperm.slane %v863_v32, 0 }
  0xfa   : > { %2072 = vmatpush.xpose.msk.msrb.mxu1 %vm458_vm0, %v3700_v52  ;;  %2089 = vmatpush.xpose.msk.msrb.mxu2 %vm458_vm0, %v3701_v53 }
  0xfb   : > { %2106 = vmatpush.xpose.msk.msrb.mxu3 %vm458_vm0, %v3702_v54 }
  0xfd   : > { %2056 = vmatpush.xpose.msk.msrb.mxu0 %vm458_vm0, %v3703_v55 }
  0xfe   : > { %2073 = vmatpush.xpose.msk.msrb.mxu1 %vm458_vm0, %v3704_v15  ;;  %2090 = vmatpush.xpose.msk.msrb.mxu2 %vm458_vm0, %v3705_v45 }
  0xff   : > { %2107 = vmatpush.xpose.msk.msrb.mxu3 %vm458_vm0, %v3706_v28 }
 0x101   : > { %2057 = vmatpush.xpose.msk.msrb.mxu0 %vm458_vm0, %v3707_v13 }
 0x102   : > { %2074 = vmatpush.xpose.msk.msrb.mxu1 %vm458_vm0, %v3708_v14  ;;  %2091 = vmatpush.xpose.msk.msrb.mxu2 %vm458_vm0, %v3709_v44  ;;  %v3410_v40 = vpop.permute.xlu0 %1008 }
 0x103   : > { %2108 = vmatpush.xpose.msk.msrb.mxu3 %vm458_vm0, %v3710_v47  ;;  %v1019_v20 = vmul.f32 %v1011_v58, %v3410_v40 }
 0x105   : > { %2058 = vmatpush.xpose.msk.msrb.mxu0 %vm458_vm0, %v3711_v60 }
 0x106   : > { %2075 = vmatpush.xpose.msk.msrb.mxu1 %vm458_vm0, %v3712_v12  ;;  %2092 = vmatpush.xpose.msk.msrb.mxu2 %vm458_vm0, %v3713_v30 }
 0x107   : > { %2109 = vmatpush.xpose.msk.msrb.mxu3 %vm458_vm0, %v3714_v62 }
 0x109   : > { %2059 = vmatpush.xpose.msk.msrb.mxu0 %vm458_vm0, %v3715_v0 }
 0x10a   : > { %2076 = vmatpush.xpose.msk.msrb.mxu1 %vm458_vm0, %v3716_v1  ;;  %2093 = vmatpush.xpose.msk.msrb.mxu2 %vm458_vm0, %v3717_v2 }
 0x10b   : > { %2110 = vmatpush.xpose.msk.msrb.mxu3 %vm458_vm0, %v3718_v6 }
 0x10d   : > { %2060 = vmatpush.xpose.msk.msrb.mxu0 %vm458_vm0, %v3719_v7 }
 0x10e   : > { %2077 = vmatpush.xpose.msk.msrb.mxu1 %vm458_vm0, %v3720_v8  ;;  %2094 = vmatpush.xpose.msk.msrb.mxu2 %vm458_vm0, %v3721_v10 }
 0x10f   : > { %2111 = vmatpush.xpose.msk.msrb.mxu3 %vm458_vm0, %v3722_v11 }
 0x111   : > { %2061 = vmatpush.xpose.msk.msrb.mxu0 %vm458_vm0, %v3723_v16 }
 0x112   : > { %2078 = vmatpush.xpose.msk.msrb.mxu1 %vm458_vm0, %v3724_v17  ;;  %2095 = vmatpush.xpose.msk.msrb.mxu2 %vm458_vm0, %v3725_v18  ;;  %v3415_v3 = vpop.permute.xlu0 %1576 }
 0x113   : > { %2112 = vmatpush.xpose.msk.msrb.mxu3 %vm458_vm0, %v3726_v19 }
 0x115   : > { %2062 = vmatpush.xpose.msk.msrb.mxu0 %vm458_vm0, %v3727_v24 }
 0x116   : > { %2079 = vmatpush.xpose.msk.msrb.mxu1 %vm458_vm0, %v3070_v63  ;;  %2096 = vmatpush.xpose.msk.msrb.mxu2 %vm458_vm0, %v3728_v25  ;;  %v903_v63 = vpop.f32.mrf.mxu2 }
 0x117   : > { %2113 = vmatpush.xpose.msk.msrb.mxu3 %vm458_vm0, %v3729_v26  ;;  %v1013_v34 = vperm.slane %v903_v63, 0 }
 0x119   : > { %2063 = vmatpush.xpose.msk.msrb.mxu0 %vm458_vm0, %v3091_v46  ;;  %v923_v46 = vpop.f32.mrf.mxu3  ;;  %v943_v41 = vpop.f32.mrf.mxu0  ;;  %v1021_v48 = vmul.f32 %v1013_v34, %v3410_v40 }
 0x11a   : > { %2080 = vmatpush.xpose.msk.msrb.mxu1 %vm458_vm0, %v3094_v61  ;;  %2097 = vmatpush.xpose.msk.msrb.mxu2 %vm458_vm0, %v3097_v29  ;;  %v883_v61 = vpop.f32.mrf.mxu1  ;;  %v1014_v35 = vperm.slane %v923_v46, 0  ;;  %v1015_v6 = vperm.slane %v943_v41, 0 }
 0x11b   : > { %2114 = vmatpush.xpose.msk.msrb.mxu3 %vm458_vm0, %v3100_v31  ;;  %v1012_v42 = vperm.slane %v883_v61, 0 }
 0x11c   : > { %2064 = vmatmul.msk.f32.vlgmr.msrb.gmra.mxu0 %vm458_vm0, %v3260_v27  ;;  %v1022_v50 = vmul.f32 %v1014_v35, %v3410_v40  ;;  %v1023_v17 = vmul.f32 %v1015_v6, %v3410_v40 }
 0x11d   : > { %2081 = vmatmul.msk.f32.vlgmr.msrb.gmra.mxu1 %vm458_vm0, %v3260_v27  ;;  %2098 = vmatmul.msk.f32.vlgmr.msrb.gmra.mxu2 %vm458_vm0, %v3260_v27  ;;  %v1020_v51 = vmul.f32 %v1012_v42, %v3410_v40 }
 0x11e   : > { %2115 = vmatmul.msk.f32.vlgmr.msrb.gmra.mxu3 %vm458_vm0, %v3260_v27 }
 0x122   : > { %v3406_v29 = vpop.f32.mrf.mxu2  ;;  %v963_v31 = vpop.f32.mrf.mxu1 }
 0x123   : > { %v3408_v33 = vpop.f32.mrf.mxu3  ;;  %v1016_v7 = vperm.slane %v963_v31, 0  ;;  %v1017_v32 = vperm.slane %v3406_v29, 0 }
 0x124   : > { %v1018_v31 = vperm.slane %v3408_v33, 0 }
 0x125   : > { %v1024_v18 = vmul.f32 %v1016_v7, %v3410_v40 }
 0x159   : > { %v1431_v5 = vpop.f32.mrf.mxu0 }
 0x15a   : > { %v1451_v27 = vpop.f32.mrf.mxu1  ;;  %v1432_v22 = vadd.f32 %v1431_v5, %v1019_v20 }
 0x15b   : > { %v1452_v59 = vadd.f32 %v1451_v27, %v1020_v51  ;;  %v1026_v27 = vmul.f32 %v1018_v31, %v3410_v40 }
 0x15c   : > { %v1579_v38 = vadd.f32 %v3415_v3, %v1432_v22 }
 0x15d   : > { %v1580_v21 = vadd.f32 %v3415_v3, %v1452_v59 }
 0x15e   : > { %v1587_v54 = vrot.slane %v1579_v38, 4 }
 0x15f   : > { %v1593_v37 = vrot.slane %v1580_v21, 4 }
 0x160   : > { %v1588_v13 = vmax.f32 %v1579_v38, %v1587_v54 }
 0x161   : > { %v1594_v53 = vmax.f32 %v1580_v21, %v1593_v37 }
 0x162   : > { %v1471_v43 = vpop.f32.mrf.mxu2  ;;  %v1589_v60 = vrot.slane %v1588_v13, 2 }
 0x163   : > { %v1491_v49 = vpop.f32.mrf.mxu3  ;;  %v1472_v56 = vadd.f32 %v1471_v43, %v1021_v48  ;;  %v1595_v45 = vrot.slane %v1594_v53, 2 }
 0x164   : > { %v1492_v57 = vadd.f32 %v1491_v49, %v1022_v50  ;;  %v1590_v0 = vmax.f32 %v1588_v13, %v1589_v60  ;;  %v1025_v49 = vmul.f32 %v1017_v32, %v3410_v40 }
 0x165   : > { %v1581_v4 = vadd.f32 %v3415_v3, %v1472_v56  ;;  %v1596_v44 = vmax.f32 %v1594_v53, %v1595_v45 }
 0x166   : > { %v1582_v9 = vadd.f32 %v3415_v3, %v1492_v57  ;;  %v1591_v10 = vrot.slane %v1590_v0, 1 }
 0x167   : > { %v1599_v23 = vrot.slane %v1581_v4, 4  ;;  %v1597_v30 = vrot.slane %v1596_v44, 1 }
 0x168   : > { %v1605_v36 = vrot.slane %v1582_v9, 4  ;;  %v3433_v26 = vmax.f32 %v1590_v0, %v1591_v10 }
 0x169   : > { %v1600_v39 = vmax.f32 %v1581_v4, %v1599_v23  ;;  %v3426_v2 = vmax.f32 %v1596_v44, %v1597_v30 }
 0x16a   : > { %v1606_v52 = vmax.f32 %v1582_v9, %v1605_v36  ;;  %v1635_v42 = vsub.f32 %v1579_v38, %v3433_v26 }
 0x16b   : > { %v1601_v55 = vrot.slane %v1600_v39, 2  ;;  %v1636_v16 = vsub.f32 %v1580_v21, %v3426_v2 }
 0x16c   : > { %v1607_v15 = vrot.slane %v1606_v52, 2  ;;  %v1643_v58 = vmul.f32 1.442695, %v1635_v42 }
 0x16d   : > { %v1602_v28 = vmax.f32 %v1600_v39, %v1601_v55  ;;  %v1645_v34 = vmul.f32 1.442695, %v1636_v16 }
 0x16e   : > { %v1608_v14 = vmax.f32 %v1606_v52, %v1607_v15 }
 0x16f   : > { %v1603_v47 = vrot.slane %v1602_v28, 1 }
 0x170   : > { %v1609_v12 = vrot.slane %v1608_v14, 1 }
 0x171   : > { %v3422_v62 = vmax.f32 %v1602_v28, %v1603_v47 }
 0x172   : > { %v3424_v1 = vmax.f32 %v1608_v14, %v1609_v12 }
 0x173   : > { %v1637_v8 = vsub.f32 %v1581_v4, %v3422_v62 }
 0x174   : > { %v1638_v11 = vsub.f32 %v1582_v9, %v3424_v1 }
 0x175   : > { %v1647_v19 = vmul.f32 1.442695, %v1637_v8 }
 0x176   : > { %v1649_v63 = vmul.f32 1.442695, %v1638_v11 }
 0x177   : > { %2162 = vpow2.f32 %v1647_v19 }
 0x178   : > { %2164 = vpow2.f32 %v1649_v63 }
 0x179   : > { %2166 = vpow2.f32 %v1645_v34 }
 0x17a   : > { %2168 = vpow2.f32 %v1643_v58 }
 0x17d   : > { %v2163_v5 = vpop.eup %2162 }
 0x17e   : > { %v2165_v21 = vpop.eup %2164  ;;  %v1671_v38 = vrot.slane %v2163_v5, 4 }
 0x17f   : > { %v2167_v36 = vpop.eup %2166  ;;  %v1677_v53 = vrot.slane %v2165_v21, 4 }
 0x180   : > { %v1665_v28 = vrot.slane %v2167_v36, 4  ;;  %v1672_v14 = vadd.f32 %v2163_v5, %v1671_v38  ;;  %v2169_v60 = vpop.eup %2168 }
 0x181   : > { %v1678_v12 = vadd.f32 %v2165_v21, %v1677_v53 }
 0x182   : > { %v1666_v8 = vadd.f32 %v2167_v36, %v1665_v28  ;;  %v1673_v16 = vrot.slane %v1672_v14, 2 }
 0x199   : > { %v1511_v24 = vpop.f32.mrf.mxu0 }
 0x19a   : > { %v1531_v25 = vpop.f32.mrf.mxu1  ;;  %v1512_v46 = vadd.f32 %v1511_v24, %v1023_v17  ;;  %v1659_v17 = vrot.slane %v2169_v60, 4 }
 0x19b   : > { %v1532_v61 = vadd.f32 %v1531_v25, %v1024_v18  ;;  %v1679_v18 = vrot.slane %v1678_v12, 2  ;;  %v1667_v25 = vrot.slane %v1666_v8, 2 }
 0x19c   : > { %v1583_v35 = vadd.f32 %v3415_v3, %v1512_v46 }
 0x19d   : > { %v1584_v41 = vadd.f32 %v3415_v3, %v1532_v61  ;;  %v1674_v61 = vadd.f32 %v1673_v16, %v1672_v14  ;;  %v1680_v32 = vadd.f32 %v1679_v18, %v1678_v12  ;;  %v1668_v42 = vadd.f32 %v1667_v25, %v1666_v8 }
 0x19e   : > { %v1611_v43 = vrot.slane %v1583_v35, 4 }
 0x19f   : > { %v1617_v48 = vrot.slane %v1584_v41, 4 }
 0x1a0   : > { %v1612_v50 = vmax.f32 %v1583_v35, %v1611_v43  ;;  %v1551_v51 = vpop.f32.mrf.mxu2 }
 0x1a1   : > { %v1618_v29 = vmax.f32 %v1584_v41, %v1617_v48  ;;  %v1571_v33 = vpop.f32.mrf.mxu3  ;;  %v1552_v56 = vadd.f32 %v1551_v51, %v1025_v49  ;;  %v1675_v49 = vrot.slane %v1674_v61, 1 }
 0x1a2   : > { %v1572_v57 = vadd.f32 %v1571_v33, %v1026_v27  ;;  %v1613_v59 = vrot.slane %v1612_v50, 2 }
 0x1a3   : > { %v1619_v4 = vrot.slane %v1618_v29, 2  ;;  %v1585_v9 = vadd.f32 %v3415_v3, %v1552_v56  ;;  %v1669_v56 = vrot.slane %v1668_v42, 1  ;;  %v1676_v58 = vadd.f32 %v1675_v49, %v1674_v61 }
 0x1a4   : > { %v1586_v20 = vadd.f32 %v3415_v3, %v1572_v57  ;;  %v1614_v22 = vmax.f32 %v1612_v50, %v1613_v59  ;;  %v1681_v50 = vrot.slane %v1680_v32, 1 }
 0x1a5   : > { %v1620_v23 = vmax.f32 %v1618_v29, %v1619_v4  ;;  %v1623_v40 = vrot.slane %v1585_v9, 4  ;;  %v1670_v36 = vadd.f32 %v1669_v56, %v1668_v42 }
 0x1a6   : > { %v1629_v37 = vrot.slane %v1586_v20, 4  ;;  %v1615_v39 = vrot.slane %v1614_v22, 1  ;;  %v1682_v5 = vadd.f32 %v1681_v50, %v1680_v32 }
 0x1a7   : > { %v1621_v52 = vrot.slane %v1620_v23, 1  ;;  %v1624_v54 = vmax.f32 %v1585_v9, %v1623_v40 }
 0x1a8   : > { %v1630_v55 = vmax.f32 %v1586_v20, %v1629_v37  ;;  %v3444_v15 = vmax.f32 %v1614_v22, %v1615_v39 }
 0x1a9   : > { %v3446_v45 = vmax.f32 %v1620_v23, %v1621_v52  ;;  %v1625_v13 = vrot.slane %v1624_v54, 2 }
 0x1aa   : > { %v1631_v3 = vrot.slane %v1630_v55, 2  ;;  %v1639_v44 = vsub.f32 %v1583_v35, %v3444_v15  ;;  %v1660_v35 = vadd.f32 %v2169_v60, %v1659_v17 }
 0x1ab   : > { %v1640_v47 = vsub.f32 %v1584_v41, %v3446_v45  ;;  %v1626_v30 = vmax.f32 %v1624_v54, %v1625_v13 }
 0x1ac   : > { %v1632_v0 = vmax.f32 %v1630_v55, %v1631_v3  ;;  %v1651_v6 = vmul.f32 1.442695, %v1639_v44  ;;  %v1661_v51 = vrot.slane %v1660_v35, 2 }
 0x1ad   : > { %v1653_v7 = vmul.f32 1.442695, %v1640_v47  ;;  %v1627_v10 = vrot.slane %v1626_v30, 1 }
 0x1ae   : > { %v1633_v11 = vrot.slane %v1632_v0, 1  ;;  %2170 = vpow2.f32 %v1651_v6 }
 0x1af   : > { %2172 = vpow2.f32 %v1653_v7  ;;  %v3450_v19 = vmax.f32 %v1626_v30, %v1627_v10 }
 0x1b0   : > { %v3452_v24 = vmax.f32 %v1632_v0, %v1633_v11 }
 0x1b1   : > { %v1641_v63 = vsub.f32 %v1585_v9, %v3450_v19 }
 0x1b2   : > { %v1642_v46 = vsub.f32 %v1586_v20, %v3452_v24  ;;  %v1662_v20 = vadd.f32 %v1661_v51, %v1660_v35 }
 0x1b3   : > { %v1655_v31 = vmul.f32 1.442695, %v1641_v63 }
 0x1b4   : > { %v1657_v34 = vmul.f32 1.442695, %v1642_v46  ;;  %v2171_v41 = vpop.eup %2170  ;;  %v1663_v54 = vrot.slane %v1662_v20, 1 }
 0x1b5   : > { %v2173_v43 = vpop.eup %2172  ;;  %v1683_v48 = vrot.slane %v2171_v41, 4  ;;  %2174 = vpow2.f32 %v1655_v31 }
 0x1b6   : > { %v1689_v27 = vrot.slane %v2173_v43, 4  ;;  %2176 = vpow2.f32 %v1657_v34  ;;  %v1664_v44 = vadd.f32 %v1663_v54, %v1662_v20 }
 0x1b7   : > { %v1684_v29 = vadd.f32 %v2171_v41, %v1683_v48  ;;  %2178 = vlog2.f32 %v1676_v58 }
 0x1b8   : > { %v1690_v33 = vadd.f32 %v2173_v43, %v1689_v27  ;;  %2180 = vlog2.f32 %v1682_v5 }
 0x1b9   : > { %v1685_v57 = vrot.slane %v1684_v29, 2  ;;  %2182 = vlog2.f32 %v1670_v36 }
 0x1ba   : > { %v1691_v59 = vrot.slane %v1690_v33, 2 }
 0x1bb   : > { %v2175_v4 = vpop.eup %2174  ;;  %v1686_v9 = vadd.f32 %v1685_v57, %v1684_v29 }
 0x1bc   : > { %v2177_v21 = vpop.eup %2176  ;;  %v1692_v22 = vadd.f32 %v1691_v59, %v1690_v33  ;;  %v1695_v23 = vrot.slane %v2175_v4, 4 }
 0x1bd   : > { %v1687_v40 = vrot.slane %v1686_v9, 1  ;;  %v1701_v37 = vrot.slane %v2177_v21, 4  ;;  %v2179_v47 = vpop.eup %2178 }
 0x1be   : > { %v1693_v38 = vrot.slane %v1692_v22, 1  ;;  %v1696_v39 = vadd.f32 %v2175_v4, %v1695_v23  ;;  %v2181_v12 = vpop.eup %2180  ;;  %v1712_v11 = vmul.f32 0.6931472, %v2179_v47 }
 0x1bf   : > { %v1688_v52 = vadd.f32 %v1687_v40, %v1686_v9  ;;  %v1702_v53 = vadd.f32 %v2177_v21, %v1701_v37  ;;  %v2183_v0 = vpop.eup %2182  ;;  %v1714_v16 = vmul.f32 0.6931472, %v2181_v12 }
 0x1c0   : > { %v1694_v55 = vadd.f32 %v1693_v38, %v1692_v22  ;;  %v1697_v28 = vrot.slane %v1696_v39, 2  ;;  %v1710_v25 = vmul.f32 0.6931472, %v2183_v0  ;;  %v1725_v63 = vadd.f32 %v1712_v11, %v3422_v62 }
 0x1c1   : > { %2184 = vlog2.f32 %v1688_v52  ;;  %v1703_v13 = vrot.slane %v1702_v53, 2  ;;  %v1726_v46 = vadd.f32 %v1714_v16, %v3424_v1 }
 0x1c2   : > { %2186 = vlog2.f32 %v1694_v55  ;;  %v1698_v3 = vadd.f32 %v1697_v28, %v1696_v39  ;;  %v1724_v35 = vadd.f32 %v1710_v25, %v3426_v2  ;;  %v1740_v43 = vrot.slane %v1725_v63, 6 }
 0x1c3   : > { %v1704_v14 = vadd.f32 %v1703_v13, %v1702_v53  ;;  %2188 = vlog2.f32 %v1664_v44  ;;  %v1741_v48 = vrot.slane %v1726_v46, 5 }
 0x1c4   : > { %v1699_v60 = vrot.slane %v1698_v3, 1  ;;  %v1739_v27 = vrot.slane %v1724_v35, 7 }
 0x1c5   : > { %v1705_v30 = vrot.slane %v1704_v14, 1 }
 0x1c6   : > { %v1700_v6 = vadd.f32 %v1699_v60, %v1698_v3 }
 0x1c7   : > { %v2185_v7 = vpop.eup %2184  ;;  %v1706_v8 = vadd.f32 %v1705_v30, %v1704_v14 }
 0x1c8   : > { %v2187_v10 = vpop.eup %2186  ;;  %2190 = vlog2.f32 %v1700_v6  ;;  %v1716_v17 = vmul.f32 0.6931472, %v2185_v7 }
 0x1c9   : > { %2192 = vlog2.f32 %v1706_v8  ;;  %v1718_v18 = vmul.f32 0.6931472, %v2187_v10  ;;  %v2189_v61 = vpop.eup %2188 }
 0x1ca   : > { %v1727_v31 = vadd.f32 %v1716_v17, %v3444_v15  ;;  %v1708_v62 = vmul.f32 0.6931472, %v2189_v61 }
 0x1cb   : > { %v1728_v34 = vadd.f32 %v1718_v18, %v3446_v45 }
 0x1cc   : > { %v1742_v15 = vrot.slane %v1727_v31, 4  ;;  %v1723_v51 = vadd.f32 %v1708_v62, %v3433_v26 }
 0x1cd   : > { %v1743_v45 = vrot.slane %v1728_v34, 3 }
 0x1ce   : > { %v2191_v32 = vpop.eup %2190  ;;  %v1747_v33 = vsel %vm1746_vm1, %v1723_v51, %v1739_v27 }
 0x1cf   : > { %v2193_v41 = vpop.eup %2192  ;;  %v1720_v42 = vmul.f32 0.6931472, %v2191_v32  ;;  %v1753_v56 = vsel %vm1752_vm4, %v1742_v15, %v1743_v45 }
 0x1d0   : > { %v1722_v49 = vmul.f32 0.6931472, %v2193_v41 }
 0x1d1   : > { %v1729_v1 = vadd.f32 %v1720_v42, %v3450_v19  ;;  %v1749_v19 = vsel %vm1748_vm2, %v1740_v43, %v1741_v48 }
 0x1d2   : > { %v1730_v2 = vadd.f32 %v1722_v49, %v3452_v24  ;;  %v1751_v57 = vsel %vm1750_vm3, %v1747_v33, %v1749_v19 }
 0x1d3   : > { %v1744_v50 = vrot.slane %v1729_v1, 2 }
 0x1d4   : > { %v1745_v29 = vrot.slane %v1730_v2, 1 }
 0x1d6   : > { %v1755_v24 = vsel %vm1754_vm5, %v1744_v50, %v1745_v29 }
 0x1d7   : > { %v1757_v58 = vsel %vm1756_vm6, %v1753_v56, %v1755_v24 }
 0x1d8   : > { %v1759_v59 = vsel %vm1758_vm7, %v1751_v57, %v1757_v58 }
 0x1d9   : > { %1761 = vst [vmem:[%s191_s19] sm:$0xff] %v1759_v59 }
 0x1da   : > { %2221 = shalt.err (!%p2218_p3)
}
 0x1db   : > { %2120 = dma.vmem_to_hbm [thread:$0]  (%p2323_p5), %s1776_s27, 128, %s1778_s28, %s1763_s29  }
 0x1dc PF: > { %p2126_p4 = scmp.ge.s32.totalorder %s2256_s18, 2  ;;  %s1789_s11 = sand.u32 1, %s2244_s15  }
 0x1dd   : > { %s1790_s12 = scalar_lea.sflag [#allocation3], %s1789_s11 }
 0x1de   : > { %p2123_p7 = pnand %p2126_p4, %p2327_p6 }
 0x1e0   : > { %p2124_p8 = pneg %p2123_p7 }
 0x1e2   : > { %2239 = dma.done.wait (%p2124_p8), %s1790_s12, 128  }
 0x1e3   : > { %2241 = vsyncadd (%p2124_p8), %s1790_s12, 4294967168  ;;  %p14_p9 = scmp.ge.s32.totalorder %s2310_s21, 6   ;;  %s3730_s15 = smov %s2248_s16 }
 0x1e4   : > { %s3731_s16 = smov %s2252_s17  ;;  %s3732_s17 = smov %s2321_s24 }
 0x1e5   : > { %s3733_s18 = smov %s2310_s21  ;;  %16 = sbr.rel (!%p14_p9) target bundleno = 3 (0x3), region = 71 }
 0x1ea   :  { %1796 = vsyncpa [#allocation3], 1 }
 0x1eb   :  { %1798 = vsyncpa [#allocation3 + $0x1], 1 }

</bundles_post_ra>
